<compile_context>
chip_gen: v7x
topology: tpu7x:2x2x1
jax: 0.10.0
libtpu: 0.0.40
codegen_flags: <defaults>
</compile_context>

<pallas_src>
import jax
import jax.numpy as jnp
from jax import lax
from jax.experimental import pallas as pl
from jax.experimental.pallas import tpu as pltpu


# ----------------------------------------------------------------------------
# Kernel
# ----------------------------------------------------------------------------
def _make_mlp_kernel(layer_dims, t_sub, chunk, compute_dtype):
    """layer_dims: tuple of (out_d, in_d) per layer (PyTorch (out, in) order)."""
    in0 = layer_dims[0][1]
    out_last = layer_dims[-1][0]
    n_chunks = t_sub // chunk

    # Flat offsets into the packed weight / bias arrays.
    w_offs, b_offs = [], []
    wo = bo = 0
    for (out_d, in_d) in layer_dims:
        w_offs.append(wo)
        b_offs.append(bo)
        wo += out_d * in_d
        bo += out_d

    def kernel(w_ref, b_ref, x_ref, o_ref):
        # w_ref: (sum out*in,) f32 in SMEM, row-major (out, in) per layer
        # b_ref: (sum out,)    f32 in SMEM
        # x_ref: (in_feat, T_sub, 128) VMEM block -- batch on sublanes+lanes
        # o_ref: (out_feat, T_sub, 128) VMEM block

        # Hoist all SMEM scalar weight / bias reads out of the chunk loop.
        ws, bs = [], []
        for l, (out_d, in_d) in enumerate(layer_dims):
            ws.append([[w_ref[w_offs[l] + o * in_d + i].astype(compute_dtype)
                        for i in range(in_d)] for o in range(out_d)])
            bs.append([b_ref[b_offs[l] + o].astype(compute_dtype)
                       for o in range(out_d)])

        def chunk_body(c, carry):
            base = pl.multiple_of(c * chunk, chunk)
            # One (chunk, 128) slab of full vregs per input feature.
            h = [x_ref[i, pl.ds(base, chunk), :].astype(compute_dtype)
                 for i in range(in0)]
            for l, (out_d, in_d) in enumerate(layer_dims):
                new_h = []
                for o in range(out_d):
                    acc = h[0] * ws[l][o][0]
                    for i in range(1, in_d):
                        acc = acc + h[i] * ws[l][o][i]      # VPU scalar*vector FMA
                    new_h.append(jnp.tanh(acc + bs[l][o]))  # EUP tanh
                h = new_h
            # Direct per-row stores (lane-dense, unmasked 128-lane vst).
            for o in range(out_last):
                o_ref[o, pl.ds(base, chunk), :] = h[o].astype(o_ref.dtype)
            return carry

        if n_chunks == 1:
            chunk_body(0, 0)
        else:
            # Bounded live ranges: only one chunk's hidden rows live at a time.
            lax.fori_loop(0, n_chunks, chunk_body, 0, unroll=n_chunks <= 8)

    return kernel


# ----------------------------------------------------------------------------
# Tiling plan
# ----------------------------------------------------------------------------
def _plan_tiling(n, max_sub_tile):
    """Returns (t_sub, grid, n_sub_pad).  Batch is padded to n_sub_pad*128."""
    n_sub = pl.cdiv(n, 128)                 # number of 128-lane groups
    if n_sub <= 8:
        t_sub, grid = n_sub, 1              # tiny batch: single (n_sub,128) block
    elif n_sub <= max_sub_tile:
        t_sub = pl.cdiv(n_sub, 8) * 8       # single big block, vreg-height aligned
        grid = 1
    else:
        t_sub = max_sub_tile
        grid = pl.cdiv(n_sub, t_sub)
        if grid % 2 == 1:
            grid += 1                       # even #steps: both v7x TCs get whole steps
    return t_sub, grid, grid * t_sub


# ----------------------------------------------------------------------------
# Wrapper
# ----------------------------------------------------------------------------
def mlp_forward(x, params, *, max_sub_tile=64, compute_dtype=jnp.float32):
    """Run the MLP forward pass as a single Pallas TPU kernel.

    x:       (N, input_features) float32
    params:  list of (W, b) with W of shape (out, in), b of shape (out,)
             (PyTorch nn.Linear convention).
    Returns (N, 2) float32.

    compute_dtype=jnp.bfloat16 is a valid speedup on v6e/v7x (keep f32 on v5e).
    """
    n, in_feat = x.shape
    layer_dims = tuple(w.shape for (w, _) in params)  # (out, in) per layer
    assert layer_dims[0][1] == in_feat, "first layer fan_in must match input"
    out_feat = layer_dims[-1][0]

    # Pack all weights / biases into flat f32 SMEM-resident arrays.
    w_flat = jnp.concatenate(
        [jnp.asarray(w, jnp.float32).reshape(-1) for (w, _) in params])
    b_flat = jnp.concatenate(
        [jnp.asarray(b, jnp.float32).reshape(-1) for (_, b) in params])

    t_sub, grid, n_sub_pad = _plan_tiling(n, max_sub_tile)
    n_pad = n_sub_pad * 128
    chunk = 8 if t_sub % 8 == 0 else t_sub

    # One fused pad + reshape + transpose pass:
    #   (N, in) -> (N_pad, in) -> (n_sub_pad, 128, in) -> (in, n_sub_pad, 128)
    xp = jnp.asarray(x, jnp.float32)
    if n_pad != n:
        xp = jnp.pad(xp, ((0, n_pad - n), (0, 0)))
    x_packed = xp.reshape(n_sub_pad, 128, in_feat).transpose(2, 0, 1)

    kernel = _make_mlp_kernel(layer_dims, t_sub, chunk, compute_dtype)

    out_packed = pl.pallas_call(
        kernel,
        out_shape=jax.ShapeDtypeStruct((out_feat, n_sub_pad, 128), jnp.float32),
        grid_spec=pltpu.PrefetchScalarGridSpec(
            num_scalar_prefetch=0,
            grid=(grid,),
            in_specs=[
                pl.BlockSpec(memory_space=pltpu.MemorySpace.SMEM),   # w_flat
                pl.BlockSpec(memory_space=pltpu.MemorySpace.SMEM),   # b_flat
                pl.BlockSpec((in_feat, t_sub, 128), lambda i: (0, i, 0)),
            ],
            out_specs=pl.BlockSpec((out_feat, t_sub, 128), lambda i: (0, i, 0)),
        ),
        compiler_params=pltpu.CompilerParams(
            dimension_semantics=("parallel",),
        ),
    )(w_flat, b_flat, x_packed)

    # Back to PyTorch (N, out_feat) layout in a single transpose+reshape pass.
    return out_packed.transpose(1, 2, 0).reshape(n_pad, out_feat)[:n]


# ----------------------------------------------------------------------------
# Deterministic parameter construction mirroring MLP.__init__
# ----------------------------------------------------------------------------
def build_mlp_params(key, input_features=2, hidden_channels=10, shift_layers=1):
    """Returns list of (W, b) pairs with the exact layer shapes of the module."""
    dims = []
    if shift_layers > 1:
        dims.append((input_features, hidden_channels))
    else:
        hidden_channels = input_features
    for _ in range(shift_layers - 2):
        dims.append((hidden_channels, hidden_channels))
    dims.append((hidden_channels, 2))

    params = []
    for (fan_in, fan_out) in dims:
        key, kw, kb = jax.random.split(key, 3)
        std = (2.0 / (fan_in + fan_out)) ** 0.5
        w = std * jax.random.normal(kw, (fan_out, fan_in), jnp.float32)  # (out, in)
        b = 0.1 * jax.random.normal(kb, (fan_out,), jnp.float32)
        params.append((w, b))
    return params


def mlp_reference(x, params):
    """Pure-JAX reference matching torch nn.Sequential([Linear, Tanh, ...])."""
    h = x
    for (w, b) in params:
        h = jnp.tanh(h @ w.T + b)
    return h


# ----------------------------------------------------------------------------
# Main
# ----------------------------------------------------------------------------
if __name__ == "__main__":
    key = jax.random.PRNGKey(0)
    kx, kx2, kx3, kp = jax.random.split(key, 4)

    input_features = 2
    hidden_channels = 10

    params3 = build_mlp_params(kp, input_features=input_features,
                               hidden_channels=hidden_channels, shift_layers=3)
    params1 = build_mlp_params(kp, input_features=input_features,
                               hidden_channels=hidden_channels, shift_layers=1)

    # 1) Small batch (single (1,128) block, single chunk), multi-layer path.
    x = jax.random.normal(kx, (16, input_features), jnp.float32)
    y3 = jax.block_until_ready(mlp_forward(x, params3))
    assert y3.shape == (16, 2)
    assert jnp.allclose(y3, mlp_reference(x, params3), atol=2e-5, rtol=2e-5), \
        "3-layer small-batch mismatch"

    # 2) Single-layer path (hidden_channels := input_features).
    y1 = jax.block_until_ready(mlp_forward(x, params1))
    assert y1.shape == (16, 2)
    assert jnp.allclose(y1, mlp_reference(x, params1), atol=2e-5, rtol=2e-5), \
        "1-layer mismatch"

    # 3) Medium batch: single grid step, multi-chunk inner fori_loop.
    x2 = jax.random.normal(kx2, (2000, input_features), jnp.float32)
    y2 = jax.block_until_ready(mlp_forward(x2, params3))
    assert y2.shape == (2000, 2)
    assert jnp.allclose(y2, mlp_reference(x2, params3), atol=2e-5, rtol=2e-5), \
        "3-layer medium-batch mismatch"

    # 4) Larger batch: multiple grid steps + batch padding exercised.
    x3 = jax.random.normal(kx3, (9000, input_features), jnp.float32)
    y4 = jax.block_until_ready(mlp_forward(x3, params3))
    assert y4.shape == (9000, 2)
    assert jnp.allclose(y4, mlp_reference(x3, params3), atol=2e-5, rtol=2e-5), \
        "3-layer large-batch mismatch"

    print("KERNEL_OK")
</pallas_src>

<mosaic_0001>
module attributes {stable_mosaic.version = 11 : i64} {
  func.func @kernel(%arg0: i32, %arg1: memref<140xf32, #tpu.memory_space<smem>>, %arg2: memref<22xf32, #tpu.memory_space<smem>>, %arg3: memref<2x1x128xf32, #tpu.memory_space<vmem>>, %arg4: memref<2x1x128xf32, #tpu.memory_space<vmem>>) attributes {dimension_semantics = [#tpu.dimension_semantics<parallel>], iteration_bounds = array<i64: 1>, scalar_prefetch = 0 : i64, scratch_operands = 0 : i64, tpu.core_type = #tpu.core_type<tc>, window_params = [{transform_indices = @transform_0, window_bounds = array<i64: 140>}, {transform_indices = @transform_1, window_bounds = array<i64: 22>}, {transform_indices = @transform_2, window_bounds = array<i64: 2, 1, 128>}, {transform_indices = @transform_3, window_bounds = array<i64: 2, 1, 128>}]} {
    %c0 = arith.constant 0 : index
    %0 = memref.load %arg1[%c0] : memref<140xf32, #tpu.memory_space<smem>>
    %c1 = arith.constant 1 : index
    %1 = memref.load %arg1[%c1] : memref<140xf32, #tpu.memory_space<smem>>
    %c2 = arith.constant 2 : index
    %2 = memref.load %arg1[%c2] : memref<140xf32, #tpu.memory_space<smem>>
    %c3 = arith.constant 3 : index
    %3 = memref.load %arg1[%c3] : memref<140xf32, #tpu.memory_space<smem>>
    %c4 = arith.constant 4 : index
    %4 = memref.load %arg1[%c4] : memref<140xf32, #tpu.memory_space<smem>>
    %c5 = arith.constant 5 : index
    %5 = memref.load %arg1[%c5] : memref<140xf32, #tpu.memory_space<smem>>
    %c6 = arith.constant 6 : index
    %6 = memref.load %arg1[%c6] : memref<140xf32, #tpu.memory_space<smem>>
    %c7 = arith.constant 7 : index
    %7 = memref.load %arg1[%c7] : memref<140xf32, #tpu.memory_space<smem>>
    %c8 = arith.constant 8 : index
    %8 = memref.load %arg1[%c8] : memref<140xf32, #tpu.memory_space<smem>>
    %c9 = arith.constant 9 : index
    %9 = memref.load %arg1[%c9] : memref<140xf32, #tpu.memory_space<smem>>
    %c10 = arith.constant 10 : index
    %10 = memref.load %arg1[%c10] : memref<140xf32, #tpu.memory_space<smem>>
    %c11 = arith.constant 11 : index
    %11 = memref.load %arg1[%c11] : memref<140xf32, #tpu.memory_space<smem>>
    %c12 = arith.constant 12 : index
    %12 = memref.load %arg1[%c12] : memref<140xf32, #tpu.memory_space<smem>>
    %c13 = arith.constant 13 : index
    %13 = memref.load %arg1[%c13] : memref<140xf32, #tpu.memory_space<smem>>
    %c14 = arith.constant 14 : index
    %14 = memref.load %arg1[%c14] : memref<140xf32, #tpu.memory_space<smem>>
    %c15 = arith.constant 15 : index
    %15 = memref.load %arg1[%c15] : memref<140xf32, #tpu.memory_space<smem>>
    %c16 = arith.constant 16 : index
    %16 = memref.load %arg1[%c16] : memref<140xf32, #tpu.memory_space<smem>>
    %c17 = arith.constant 17 : index
    %17 = memref.load %arg1[%c17] : memref<140xf32, #tpu.memory_space<smem>>
    %c18 = arith.constant 18 : index
    %18 = memref.load %arg1[%c18] : memref<140xf32, #tpu.memory_space<smem>>
    %c19 = arith.constant 19 : index
    %19 = memref.load %arg1[%c19] : memref<140xf32, #tpu.memory_space<smem>>
    %c0_0 = arith.constant 0 : index
    %20 = memref.load %arg2[%c0_0] : memref<22xf32, #tpu.memory_space<smem>>
    %c1_1 = arith.constant 1 : index
    %21 = memref.load %arg2[%c1_1] : memref<22xf32, #tpu.memory_space<smem>>
    %c2_2 = arith.constant 2 : index
    %22 = memref.load %arg2[%c2_2] : memref<22xf32, #tpu.memory_space<smem>>
    %c3_3 = arith.constant 3 : index
    %23 = memref.load %arg2[%c3_3] : memref<22xf32, #tpu.memory_space<smem>>
    %c4_4 = arith.constant 4 : index
    %24 = memref.load %arg2[%c4_4] : memref<22xf32, #tpu.memory_space<smem>>
    %c5_5 = arith.constant 5 : index
    %25 = memref.load %arg2[%c5_5] : memref<22xf32, #tpu.memory_space<smem>>
    %c6_6 = arith.constant 6 : index
    %26 = memref.load %arg2[%c6_6] : memref<22xf32, #tpu.memory_space<smem>>
    %c7_7 = arith.constant 7 : index
    %27 = memref.load %arg2[%c7_7] : memref<22xf32, #tpu.memory_space<smem>>
    %c8_8 = arith.constant 8 : index
    %28 = memref.load %arg2[%c8_8] : memref<22xf32, #tpu.memory_space<smem>>
    %c9_9 = arith.constant 9 : index
    %29 = memref.load %arg2[%c9_9] : memref<22xf32, #tpu.memory_space<smem>>
    %c20 = arith.constant 20 : index
    %30 = memref.load %arg1[%c20] : memref<140xf32, #tpu.memory_space<smem>>
    %c21 = arith.constant 21 : index
    %31 = memref.load %arg1[%c21] : memref<140xf32, #tpu.memory_space<smem>>
    %c22 = arith.constant 22 : index
    %32 = memref.load %arg1[%c22] : memref<140xf32, #tpu.memory_space<smem>>
    %c23 = arith.constant 23 : index
    %33 = memref.load %arg1[%c23] : memref<140xf32, #tpu.memory_space<smem>>
    %c24 = arith.constant 24 : index
    %34 = memref.load %arg1[%c24] : memref<140xf32, #tpu.memory_space<smem>>
    %c25 = arith.constant 25 : index
    %35 = memref.load %arg1[%c25] : memref<140xf32, #tpu.memory_space<smem>>
    %c26 = arith.constant 26 : index
    %36 = memref.load %arg1[%c26] : memref<140xf32, #tpu.memory_space<smem>>
    %c27 = arith.constant 27 : index
    %37 = memref.load %arg1[%c27] : memref<140xf32, #tpu.memory_space<smem>>
    %c28 = arith.constant 28 : index
    %38 = memref.load %arg1[%c28] : memref<140xf32, #tpu.memory_space<smem>>
    %c29 = arith.constant 29 : index
    %39 = memref.load %arg1[%c29] : memref<140xf32, #tpu.memory_space<smem>>
    %c30 = arith.constant 30 : index
    %40 = memref.load %arg1[%c30] : memref<140xf32, #tpu.memory_space<smem>>
    %c31 = arith.constant 31 : index
    %41 = memref.load %arg1[%c31] : memref<140xf32, #tpu.memory_space<smem>>
    %c32 = arith.constant 32 : index
    %42 = memref.load %arg1[%c32] : memref<140xf32, #tpu.memory_space<smem>>
    %c33 = arith.constant 33 : index
    %43 = memref.load %arg1[%c33] : memref<140xf32, #tpu.memory_space<smem>>
    %c34 = arith.constant 34 : index
    %44 = memref.load %arg1[%c34] : memref<140xf32, #tpu.memory_space<smem>>
    %c35 = arith.constant 35 : index
    %45 = memref.load %arg1[%c35] : memref<140xf32, #tpu.memory_space<smem>>
    %c36 = arith.constant 36 : index
    %46 = memref.load %arg1[%c36] : memref<140xf32, #tpu.memory_space<smem>>
    %c37 = arith.constant 37 : index
    %47 = memref.load %arg1[%c37] : memref<140xf32, #tpu.memory_space<smem>>
    %c38 = arith.constant 38 : index
    %48 = memref.load %arg1[%c38] : memref<140xf32, #tpu.memory_space<smem>>
    %c39 = arith.constant 39 : index
    %49 = memref.load %arg1[%c39] : memref<140xf32, #tpu.memory_space<smem>>
    %c40 = arith.constant 40 : index
    %50 = memref.load %arg1[%c40] : memref<140xf32, #tpu.memory_space<smem>>
    %c41 = arith.constant 41 : index
    %51 = memref.load %arg1[%c41] : memref<140xf32, #tpu.memory_space<smem>>
    %c42 = arith.constant 42 : index
    %52 = memref.load %arg1[%c42] : memref<140xf32, #tpu.memory_space<smem>>
    %c43 = arith.constant 43 : index
    %53 = memref.load %arg1[%c43] : memref<140xf32, #tpu.memory_space<smem>>
    %c44 = arith.constant 44 : index
    %54 = memref.load %arg1[%c44] : memref<140xf32, #tpu.memory_space<smem>>
    %c45 = arith.constant 45 : index
    %55 = memref.load %arg1[%c45] : memref<140xf32, #tpu.memory_space<smem>>
    %c46 = arith.constant 46 : index
    %56 = memref.load %arg1[%c46] : memref<140xf32, #tpu.memory_space<smem>>
    %c47 = arith.constant 47 : index
    %57 = memref.load %arg1[%c47] : memref<140xf32, #tpu.memory_space<smem>>
    %c48 = arith.constant 48 : index
    %58 = memref.load %arg1[%c48] : memref<140xf32, #tpu.memory_space<smem>>
    %c49 = arith.constant 49 : index
    %59 = memref.load %arg1[%c49] : memref<140xf32, #tpu.memory_space<smem>>
    %c50 = arith.constant 50 : index
    %60 = memref.load %arg1[%c50] : memref<140xf32, #tpu.memory_space<smem>>
    %c51 = arith.constant 51 : index
    %61 = memref.load %arg1[%c51] : memref<140xf32, #tpu.memory_space<smem>>
    %c52 = arith.constant 52 : index
    %62 = memref.load %arg1[%c52] : memref<140xf32, #tpu.memory_space<smem>>
    %c53 = arith.constant 53 : index
    %63 = memref.load %arg1[%c53] : memref<140xf32, #tpu.memory_space<smem>>
    %c54 = arith.constant 54 : index
    %64 = memref.load %arg1[%c54] : memref<140xf32, #tpu.memory_space<smem>>
    %c55 = arith.constant 55 : index
    %65 = memref.load %arg1[%c55] : memref<140xf32, #tpu.memory_space<smem>>
    %c56 = arith.constant 56 : index
    %66 = memref.load %arg1[%c56] : memref<140xf32, #tpu.memory_space<smem>>
    %c57 = arith.constant 57 : index
    %67 = memref.load %arg1[%c57] : memref<140xf32, #tpu.memory_space<smem>>
    %c58 = arith.constant 58 : index
    %68 = memref.load %arg1[%c58] : memref<140xf32, #tpu.memory_space<smem>>
    %c59 = arith.constant 59 : index
    %69 = memref.load %arg1[%c59] : memref<140xf32, #tpu.memory_space<smem>>
    %c60 = arith.constant 60 : index
    %70 = memref.load %arg1[%c60] : memref<140xf32, #tpu.memory_space<smem>>
    %c61 = arith.constant 61 : index
    %71 = memref.load %arg1[%c61] : memref<140xf32, #tpu.memory_space<smem>>
    %c62 = arith.constant 62 : index
    %72 = memref.load %arg1[%c62] : memref<140xf32, #tpu.memory_space<smem>>
    %c63 = arith.constant 63 : index
    %73 = memref.load %arg1[%c63] : memref<140xf32, #tpu.memory_space<smem>>
    %c64 = arith.constant 64 : index
    %74 = memref.load %arg1[%c64] : memref<140xf32, #tpu.memory_space<smem>>
    %c65 = arith.constant 65 : index
    %75 = memref.load %arg1[%c65] : memref<140xf32, #tpu.memory_space<smem>>
    %c66 = arith.constant 66 : index
    %76 = memref.load %arg1[%c66] : memref<140xf32, #tpu.memory_space<smem>>
    %c67 = arith.constant 67 : index
    %77 = memref.load %arg1[%c67] : memref<140xf32, #tpu.memory_space<smem>>
    %c68 = arith.constant 68 : index
    %78 = memref.load %arg1[%c68] : memref<140xf32, #tpu.memory_space<smem>>
    %c69 = arith.constant 69 : index
    %79 = memref.load %arg1[%c69] : memref<140xf32, #tpu.memory_space<smem>>
    %c70 = arith.constant 70 : index
    %80 = memref.load %arg1[%c70] : memref<140xf32, #tpu.memory_space<smem>>
    %c71 = arith.constant 71 : index
    %81 = memref.load %arg1[%c71] : memref<140xf32, #tpu.memory_space<smem>>
    %c72 = arith.constant 72 : index
    %82 = memref.load %arg1[%c72] : memref<140xf32, #tpu.memory_space<smem>>
    %c73 = arith.constant 73 : index
    %83 = memref.load %arg1[%c73] : memref<140xf32, #tpu.memory_space<smem>>
    %c74 = arith.constant 74 : index
    %84 = memref.load %arg1[%c74] : memref<140xf32, #tpu.memory_space<smem>>
    %c75 = arith.constant 75 : index
    %85 = memref.load %arg1[%c75] : memref<140xf32, #tpu.memory_space<smem>>
    %c76 = arith.constant 76 : index
    %86 = memref.load %arg1[%c76] : memref<140xf32, #tpu.memory_space<smem>>
    %c77 = arith.constant 77 : index
    %87 = memref.load %arg1[%c77] : memref<140xf32, #tpu.memory_space<smem>>
    %c78 = arith.constant 78 : index
    %88 = memref.load %arg1[%c78] : memref<140xf32, #tpu.memory_space<smem>>
    %c79 = arith.constant 79 : index
    %89 = memref.load %arg1[%c79] : memref<140xf32, #tpu.memory_space<smem>>
    %c80 = arith.constant 80 : index
    %90 = memref.load %arg1[%c80] : memref<140xf32, #tpu.memory_space<smem>>
    %c81 = arith.constant 81 : index
    %91 = memref.load %arg1[%c81] : memref<140xf32, #tpu.memory_space<smem>>
    %c82 = arith.constant 82 : index
    %92 = memref.load %arg1[%c82] : memref<140xf32, #tpu.memory_space<smem>>
    %c83 = arith.constant 83 : index
    %93 = memref.load %arg1[%c83] : memref<140xf32, #tpu.memory_space<smem>>
    %c84 = arith.constant 84 : index
    %94 = memref.load %arg1[%c84] : memref<140xf32, #tpu.memory_space<smem>>
    %c85 = arith.constant 85 : index
    %95 = memref.load %arg1[%c85] : memref<140xf32, #tpu.memory_space<smem>>
    %c86 = arith.constant 86 : index
    %96 = memref.load %arg1[%c86] : memref<140xf32, #tpu.memory_space<smem>>
    %c87 = arith.constant 87 : index
    %97 = memref.load %arg1[%c87] : memref<140xf32, #tpu.memory_space<smem>>
    %c88 = arith.constant 88 : index
    %98 = memref.load %arg1[%c88] : memref<140xf32, #tpu.memory_space<smem>>
    %c89 = arith.constant 89 : index
    %99 = memref.load %arg1[%c89] : memref<140xf32, #tpu.memory_space<smem>>
    %c90 = arith.constant 90 : index
    %100 = memref.load %arg1[%c90] : memref<140xf32, #tpu.memory_space<smem>>
    %c91 = arith.constant 91 : index
    %101 = memref.load %arg1[%c91] : memref<140xf32, #tpu.memory_space<smem>>
    %c92 = arith.constant 92 : index
    %102 = memref.load %arg1[%c92] : memref<140xf32, #tpu.memory_space<smem>>
    %c93 = arith.constant 93 : index
    %103 = memref.load %arg1[%c93] : memref<140xf32, #tpu.memory_space<smem>>
    %c94 = arith.constant 94 : index
    %104 = memref.load %arg1[%c94] : memref<140xf32, #tpu.memory_space<smem>>
    %c95 = arith.constant 95 : index
    %105 = memref.load %arg1[%c95] : memref<140xf32, #tpu.memory_space<smem>>
    %c96 = arith.constant 96 : index
    %106 = memref.load %arg1[%c96] : memref<140xf32, #tpu.memory_space<smem>>
    %c97 = arith.constant 97 : index
    %107 = memref.load %arg1[%c97] : memref<140xf32, #tpu.memory_space<smem>>
    %c98 = arith.constant 98 : index
    %108 = memref.load %arg1[%c98] : memref<140xf32, #tpu.memory_space<smem>>
    %c99 = arith.constant 99 : index
    %109 = memref.load %arg1[%c99] : memref<140xf32, #tpu.memory_space<smem>>
    %c100 = arith.constant 100 : index
    %110 = memref.load %arg1[%c100] : memref<140xf32, #tpu.memory_space<smem>>
    %c101 = arith.constant 101 : index
    %111 = memref.load %arg1[%c101] : memref<140xf32, #tpu.memory_space<smem>>
    %c102 = arith.constant 102 : index
    %112 = memref.load %arg1[%c102] : memref<140xf32, #tpu.memory_space<smem>>
    %c103 = arith.constant 103 : index
    %113 = memref.load %arg1[%c103] : memref<140xf32, #tpu.memory_space<smem>>
    %c104 = arith.constant 104 : index
    %114 = memref.load %arg1[%c104] : memref<140xf32, #tpu.memory_space<smem>>
    %c105 = arith.constant 105 : index
    %115 = memref.load %arg1[%c105] : memref<140xf32, #tpu.memory_space<smem>>
    %c106 = arith.constant 106 : index
    %116 = memref.load %arg1[%c106] : memref<140xf32, #tpu.memory_space<smem>>
    %c107 = arith.constant 107 : index
    %117 = memref.load %arg1[%c107] : memref<140xf32, #tpu.memory_space<smem>>
    %c108 = arith.constant 108 : index
    %118 = memref.load %arg1[%c108] : memref<140xf32, #tpu.memory_space<smem>>
    %c109 = arith.constant 109 : index
    %119 = memref.load %arg1[%c109] : memref<140xf32, #tpu.memory_space<smem>>
    %c110 = arith.constant 110 : index
    %120 = memref.load %arg1[%c110] : memref<140xf32, #tpu.memory_space<smem>>
    %c111 = arith.constant 111 : index
    %121 = memref.load %arg1[%c111] : memref<140xf32, #tpu.memory_space<smem>>
    %c112 = arith.constant 112 : index
    %122 = memref.load %arg1[%c112] : memref<140xf32, #tpu.memory_space<smem>>
    %c113 = arith.constant 113 : index
    %123 = memref.load %arg1[%c113] : memref<140xf32, #tpu.memory_space<smem>>
    %c114 = arith.constant 114 : index
    %124 = memref.load %arg1[%c114] : memref<140xf32, #tpu.memory_space<smem>>
    %c115 = arith.constant 115 : index
    %125 = memref.load %arg1[%c115] : memref<140xf32, #tpu.memory_space<smem>>
    %c116 = arith.constant 116 : index
    %126 = memref.load %arg1[%c116] : memref<140xf32, #tpu.memory_space<smem>>
    %c117 = arith.constant 117 : index
    %127 = memref.load %arg1[%c117] : memref<140xf32, #tpu.memory_space<smem>>
    %c118 = arith.constant 118 : index
    %128 = memref.load %arg1[%c118] : memref<140xf32, #tpu.memory_space<smem>>
    %c119 = arith.constant 119 : index
    %129 = memref.load %arg1[%c119] : memref<140xf32, #tpu.memory_space<smem>>
    %c10_10 = arith.constant 10 : index
    %130 = memref.load %arg2[%c10_10] : memref<22xf32, #tpu.memory_space<smem>>
    %c11_11 = arith.constant 11 : index
    %131 = memref.load %arg2[%c11_11] : memref<22xf32, #tpu.memory_space<smem>>
    %c12_12 = arith.constant 12 : index
    %132 = memref.load %arg2[%c12_12] : memref<22xf32, #tpu.memory_space<smem>>
    %c13_13 = arith.constant 13 : index
    %133 = memref.load %arg2[%c13_13] : memref<22xf32, #tpu.memory_space<smem>>
    %c14_14 = arith.constant 14 : index
    %134 = memref.load %arg2[%c14_14] : memref<22xf32, #tpu.memory_space<smem>>
    %c15_15 = arith.constant 15 : index
    %135 = memref.load %arg2[%c15_15] : memref<22xf32, #tpu.memory_space<smem>>
    %c16_16 = arith.constant 16 : index
    %136 = memref.load %arg2[%c16_16] : memref<22xf32, #tpu.memory_space<smem>>
    %c17_17 = arith.constant 17 : index
    %137 = memref.load %arg2[%c17_17] : memref<22xf32, #tpu.memory_space<smem>>
    %c18_18 = arith.constant 18 : index
    %138 = memref.load %arg2[%c18_18] : memref<22xf32, #tpu.memory_space<smem>>
    %c19_19 = arith.constant 19 : index
    %139 = memref.load %arg2[%c19_19] : memref<22xf32, #tpu.memory_space<smem>>
    %c120 = arith.constant 120 : index
    %140 = memref.load %arg1[%c120] : memref<140xf32, #tpu.memory_space<smem>>
    %c121 = arith.constant 121 : index
    %141 = memref.load %arg1[%c121] : memref<140xf32, #tpu.memory_space<smem>>
    %c122 = arith.constant 122 : index
    %142 = memref.load %arg1[%c122] : memref<140xf32, #tpu.memory_space<smem>>
    %c123 = arith.constant 123 : index
    %143 = memref.load %arg1[%c123] : memref<140xf32, #tpu.memory_space<smem>>
    %c124 = arith.constant 124 : index
    %144 = memref.load %arg1[%c124] : memref<140xf32, #tpu.memory_space<smem>>
    %c125 = arith.constant 125 : index
    %145 = memref.load %arg1[%c125] : memref<140xf32, #tpu.memory_space<smem>>
    %c126 = arith.constant 126 : index
    %146 = memref.load %arg1[%c126] : memref<140xf32, #tpu.memory_space<smem>>
    %c127 = arith.constant 127 : index
    %147 = memref.load %arg1[%c127] : memref<140xf32, #tpu.memory_space<smem>>
    %c128 = arith.constant 128 : index
    %148 = memref.load %arg1[%c128] : memref<140xf32, #tpu.memory_space<smem>>
    %c129 = arith.constant 129 : index
    %149 = memref.load %arg1[%c129] : memref<140xf32, #tpu.memory_space<smem>>
    %c130 = arith.constant 130 : index
    %150 = memref.load %arg1[%c130] : memref<140xf32, #tpu.memory_space<smem>>
    %c131 = arith.constant 131 : index
    %151 = memref.load %arg1[%c131] : memref<140xf32, #tpu.memory_space<smem>>
    %c132 = arith.constant 132 : index
    %152 = memref.load %arg1[%c132] : memref<140xf32, #tpu.memory_space<smem>>
    %c133 = arith.constant 133 : index
    %153 = memref.load %arg1[%c133] : memref<140xf32, #tpu.memory_space<smem>>
    %c134 = arith.constant 134 : index
    %154 = memref.load %arg1[%c134] : memref<140xf32, #tpu.memory_space<smem>>
    %c135 = arith.constant 135 : index
    %155 = memref.load %arg1[%c135] : memref<140xf32, #tpu.memory_space<smem>>
    %c136 = arith.constant 136 : index
    %156 = memref.load %arg1[%c136] : memref<140xf32, #tpu.memory_space<smem>>
    %c137 = arith.constant 137 : index
    %157 = memref.load %arg1[%c137] : memref<140xf32, #tpu.memory_space<smem>>
    %c138 = arith.constant 138 : index
    %158 = memref.load %arg1[%c138] : memref<140xf32, #tpu.memory_space<smem>>
    %c139 = arith.constant 139 : index
    %159 = memref.load %arg1[%c139] : memref<140xf32, #tpu.memory_space<smem>>
    %c20_20 = arith.constant 20 : index
    %160 = memref.load %arg2[%c20_20] : memref<22xf32, #tpu.memory_space<smem>>
    %c21_21 = arith.constant 21 : index
    %161 = memref.load %arg2[%c21_21] : memref<22xf32, #tpu.memory_space<smem>>
    %c0_i32 = arith.constant 0 : i32
    %162 = tpu.assume_multiple %c0_i32, 1 : i32
    %c0_22 = arith.constant 0 : index
    %163 = arith.index_cast %162 : i32 to index
    %c0_23 = arith.constant 0 : index
    %164 = vector.load %arg3[%c0_22, %163, %c0_23] : memref<2x1x128xf32, #tpu.memory_space<vmem>>, vector<1x1x128xf32>
    %165 = vector.shape_cast %164 : vector<1x1x128xf32> to vector<1x128xf32>
    %c1_24 = arith.constant 1 : index
    %166 = arith.index_cast %162 : i32 to index
    %c0_25 = arith.constant 0 : index
    %167 = vector.load %arg3[%c1_24, %166, %c0_25] : memref<2x1x128xf32, #tpu.memory_space<vmem>>, vector<1x1x128xf32>
    %168 = vector.shape_cast %167 : vector<1x1x128xf32> to vector<1x128xf32>
    %169 = vector.broadcast %0 : f32 to vector<1x128xf32>
    %170 = arith.mulf %165, %169 : vector<1x128xf32>
    %171 = vector.broadcast %1 : f32 to vector<1x128xf32>
    %172 = arith.mulf %168, %171 : vector<1x128xf32>
    %173 = arith.addf %170, %172 : vector<1x128xf32>
    %174 = vector.broadcast %20 : f32 to vector<1x128xf32>
    %175 = arith.addf %173, %174 : vector<1x128xf32>
    %176 = math.tanh %175 : vector<1x128xf32>
    %177 = vector.broadcast %2 : f32 to vector<1x128xf32>
    %178 = arith.mulf %165, %177 : vector<1x128xf32>
    %179 = vector.broadcast %3 : f32 to vector<1x128xf32>
    %180 = arith.mulf %168, %179 : vector<1x128xf32>
    %181 = arith.addf %178, %180 : vector<1x128xf32>
    %182 = vector.broadcast %21 : f32 to vector<1x128xf32>
    %183 = arith.addf %181, %182 : vector<1x128xf32>
    %184 = math.tanh %183 : vector<1x128xf32>
    %185 = vector.broadcast %4 : f32 to vector<1x128xf32>
    %186 = arith.mulf %165, %185 : vector<1x128xf32>
    %187 = vector.broadcast %5 : f32 to vector<1x128xf32>
    %188 = arith.mulf %168, %187 : vector<1x128xf32>
    %189 = arith.addf %186, %188 : vector<1x128xf32>
    %190 = vector.broadcast %22 : f32 to vector<1x128xf32>
    %191 = arith.addf %189, %190 : vector<1x128xf32>
    %192 = math.tanh %191 : vector<1x128xf32>
    %193 = vector.broadcast %6 : f32 to vector<1x128xf32>
    %194 = arith.mulf %165, %193 : vector<1x128xf32>
    %195 = vector.broadcast %7 : f32 to vector<1x128xf32>
    %196 = arith.mulf %168, %195 : vector<1x128xf32>
    %197 = arith.addf %194, %196 : vector<1x128xf32>
    %198 = vector.broadcast %23 : f32 to vector<1x128xf32>
    %199 = arith.addf %197, %198 : vector<1x128xf32>
    %200 = math.tanh %199 : vector<1x128xf32>
    %201 = vector.broadcast %8 : f32 to vector<1x128xf32>
    %202 = arith.mulf %165, %201 : vector<1x128xf32>
    %203 = vector.broadcast %9 : f32 to vector<1x128xf32>
    %204 = arith.mulf %168, %203 : vector<1x128xf32>
    %205 = arith.addf %202, %204 : vector<1x128xf32>
    %206 = vector.broadcast %24 : f32 to vector<1x128xf32>
    %207 = arith.addf %205, %206 : vector<1x128xf32>
    %208 = math.tanh %207 : vector<1x128xf32>
    %209 = vector.broadcast %10 : f32 to vector<1x128xf32>
    %210 = arith.mulf %165, %209 : vector<1x128xf32>
    %211 = vector.broadcast %11 : f32 to vector<1x128xf32>
    %212 = arith.mulf %168, %211 : vector<1x128xf32>
    %213 = arith.addf %210, %212 : vector<1x128xf32>
    %214 = vector.broadcast %25 : f32 to vector<1x128xf32>
    %215 = arith.addf %213, %214 : vector<1x128xf32>
    %216 = math.tanh %215 : vector<1x128xf32>
    %217 = vector.broadcast %12 : f32 to vector<1x128xf32>
    %218 = arith.mulf %165, %217 : vector<1x128xf32>
    %219 = vector.broadcast %13 : f32 to vector<1x128xf32>
    %220 = arith.mulf %168, %219 : vector<1x128xf32>
    %221 = arith.addf %218, %220 : vector<1x128xf32>
    %222 = vector.broadcast %26 : f32 to vector<1x128xf32>
    %223 = arith.addf %221, %222 : vector<1x128xf32>
    %224 = math.tanh %223 : vector<1x128xf32>
    %225 = vector.broadcast %14 : f32 to vector<1x128xf32>
    %226 = arith.mulf %165, %225 : vector<1x128xf32>
    %227 = vector.broadcast %15 : f32 to vector<1x128xf32>
    %228 = arith.mulf %168, %227 : vector<1x128xf32>
    %229 = arith.addf %226, %228 : vector<1x128xf32>
    %230 = vector.broadcast %27 : f32 to vector<1x128xf32>
    %231 = arith.addf %229, %230 : vector<1x128xf32>
    %232 = math.tanh %231 : vector<1x128xf32>
    %233 = vector.broadcast %16 : f32 to vector<1x128xf32>
    %234 = arith.mulf %165, %233 : vector<1x128xf32>
    %235 = vector.broadcast %17 : f32 to vector<1x128xf32>
    %236 = arith.mulf %168, %235 : vector<1x128xf32>
    %237 = arith.addf %234, %236 : vector<1x128xf32>
    %238 = vector.broadcast %28 : f32 to vector<1x128xf32>
    %239 = arith.addf %237, %238 : vector<1x128xf32>
    %240 = math.tanh %239 : vector<1x128xf32>
    %241 = vector.broadcast %18 : f32 to vector<1x128xf32>
    %242 = arith.mulf %165, %241 : vector<1x128xf32>
    %243 = vector.broadcast %19 : f32 to vector<1x128xf32>
    %244 = arith.mulf %168, %243 : vector<1x128xf32>
    %245 = arith.addf %242, %244 : vector<1x128xf32>
    %246 = vector.broadcast %29 : f32 to vector<1x128xf32>
    %247 = arith.addf %245, %246 : vector<1x128xf32>
    %248 = math.tanh %247 : vector<1x128xf32>
    %249 = vector.broadcast %30 : f32 to vector<1x128xf32>
    %250 = arith.mulf %176, %249 : vector<1x128xf32>
    %251 = vector.broadcast %31 : f32 to vector<1x128xf32>
    %252 = arith.mulf %184, %251 : vector<1x128xf32>
    %253 = arith.addf %250, %252 : vector<1x128xf32>
    %254 = vector.broadcast %32 : f32 to vector<1x128xf32>
    %255 = arith.mulf %192, %254 : vector<1x128xf32>
    %256 = arith.addf %253, %255 : vector<1x128xf32>
    %257 = vector.broadcast %33 : f32 to vector<1x128xf32>
    %258 = arith.mulf %200, %257 : vector<1x128xf32>
    %259 = arith.addf %256, %258 : vector<1x128xf32>
    %260 = vector.broadcast %34 : f32 to vector<1x128xf32>
    %261 = arith.mulf %208, %260 : vector<1x128xf32>
    %262 = arith.addf %259, %261 : vector<1x128xf32>
    %263 = vector.broadcast %35 : f32 to vector<1x128xf32>
    %264 = arith.mulf %216, %263 : vector<1x128xf32>
    %265 = arith.addf %262, %264 : vector<1x128xf32>
    %266 = vector.broadcast %36 : f32 to vector<1x128xf32>
    %267 = arith.mulf %224, %266 : vector<1x128xf32>
    %268 = arith.addf %265, %267 : vector<1x128xf32>
    %269 = vector.broadcast %37 : f32 to vector<1x128xf32>
    %270 = arith.mulf %232, %269 : vector<1x128xf32>
    %271 = arith.addf %268, %270 : vector<1x128xf32>
    %272 = vector.broadcast %38 : f32 to vector<1x128xf32>
    %273 = arith.mulf %240, %272 : vector<1x128xf32>
    %274 = arith.addf %271, %273 : vector<1x128xf32>
    %275 = vector.broadcast %39 : f32 to vector<1x128xf32>
    %276 = arith.mulf %248, %275 : vector<1x128xf32>
    %277 = arith.addf %274, %276 : vector<1x128xf32>
    %278 = vector.broadcast %130 : f32 to vector<1x128xf32>
    %279 = arith.addf %277, %278 : vector<1x128xf32>
    %280 = math.tanh %279 : vector<1x128xf32>
    %281 = vector.broadcast %40 : f32 to vector<1x128xf32>
    %282 = arith.mulf %176, %281 : vector<1x128xf32>
    %283 = vector.broadcast %41 : f32 to vector<1x128xf32>
    %284 = arith.mulf %184, %283 : vector<1x128xf32>
    %285 = arith.addf %282, %284 : vector<1x128xf32>
    %286 = vector.broadcast %42 : f32 to vector<1x128xf32>
    %287 = arith.mulf %192, %286 : vector<1x128xf32>
    %288 = arith.addf %285, %287 : vector<1x128xf32>
    %289 = vector.broadcast %43 : f32 to vector<1x128xf32>
    %290 = arith.mulf %200, %289 : vector<1x128xf32>
    %291 = arith.addf %288, %290 : vector<1x128xf32>
    %292 = vector.broadcast %44 : f32 to vector<1x128xf32>
    %293 = arith.mulf %208, %292 : vector<1x128xf32>
    %294 = arith.addf %291, %293 : vector<1x128xf32>
    %295 = vector.broadcast %45 : f32 to vector<1x128xf32>
    %296 = arith.mulf %216, %295 : vector<1x128xf32>
    %297 = arith.addf %294, %296 : vector<1x128xf32>
    %298 = vector.broadcast %46 : f32 to vector<1x128xf32>
    %299 = arith.mulf %224, %298 : vector<1x128xf32>
    %300 = arith.addf %297, %299 : vector<1x128xf32>
    %301 = vector.broadcast %47 : f32 to vector<1x128xf32>
    %302 = arith.mulf %232, %301 : vector<1x128xf32>
    %303 = arith.addf %300, %302 : vector<1x128xf32>
    %304 = vector.broadcast %48 : f32 to vector<1x128xf32>
    %305 = arith.mulf %240, %304 : vector<1x128xf32>
    %306 = arith.addf %303, %305 : vector<1x128xf32>
    %307 = vector.broadcast %49 : f32 to vector<1x128xf32>
    %308 = arith.mulf %248, %307 : vector<1x128xf32>
    %309 = arith.addf %306, %308 : vector<1x128xf32>
    %310 = vector.broadcast %131 : f32 to vector<1x128xf32>
    %311 = arith.addf %309, %310 : vector<1x128xf32>
    %312 = math.tanh %311 : vector<1x128xf32>
    %313 = vector.broadcast %50 : f32 to vector<1x128xf32>
    %314 = arith.mulf %176, %313 : vector<1x128xf32>
    %315 = vector.broadcast %51 : f32 to vector<1x128xf32>
    %316 = arith.mulf %184, %315 : vector<1x128xf32>
    %317 = arith.addf %314, %316 : vector<1x128xf32>
    %318 = vector.broadcast %52 : f32 to vector<1x128xf32>
    %319 = arith.mulf %192, %318 : vector<1x128xf32>
    %320 = arith.addf %317, %319 : vector<1x128xf32>
    %321 = vector.broadcast %53 : f32 to vector<1x128xf32>
    %322 = arith.mulf %200, %321 : vector<1x128xf32>
    %323 = arith.addf %320, %322 : vector<1x128xf32>
    %324 = vector.broadcast %54 : f32 to vector<1x128xf32>
    %325 = arith.mulf %208, %324 : vector<1x128xf32>
    %326 = arith.addf %323, %325 : vector<1x128xf32>
    %327 = vector.broadcast %55 : f32 to vector<1x128xf32>
    %328 = arith.mulf %216, %327 : vector<1x128xf32>
    %329 = arith.addf %326, %328 : vector<1x128xf32>
    %330 = vector.broadcast %56 : f32 to vector<1x128xf32>
    %331 = arith.mulf %224, %330 : vector<1x128xf32>
    %332 = arith.addf %329, %331 : vector<1x128xf32>
    %333 = vector.broadcast %57 : f32 to vector<1x128xf32>
    %334 = arith.mulf %232, %333 : vector<1x128xf32>
    %335 = arith.addf %332, %334 : vector<1x128xf32>
    %336 = vector.broadcast %58 : f32 to vector<1x128xf32>
    %337 = arith.mulf %240, %336 : vector<1x128xf32>
    %338 = arith.addf %335, %337 : vector<1x128xf32>
    %339 = vector.broadcast %59 : f32 to vector<1x128xf32>
    %340 = arith.mulf %248, %339 : vector<1x128xf32>
    %341 = arith.addf %338, %340 : vector<1x128xf32>
    %342 = vector.broadcast %132 : f32 to vector<1x128xf32>
    %343 = arith.addf %341, %342 : vector<1x128xf32>
    %344 = math.tanh %343 : vector<1x128xf32>
    %345 = vector.broadcast %60 : f32 to vector<1x128xf32>
    %346 = arith.mulf %176, %345 : vector<1x128xf32>
    %347 = vector.broadcast %61 : f32 to vector<1x128xf32>
    %348 = arith.mulf %184, %347 : vector<1x128xf32>
    %349 = arith.addf %346, %348 : vector<1x128xf32>
    %350 = vector.broadcast %62 : f32 to vector<1x128xf32>
    %351 = arith.mulf %192, %350 : vector<1x128xf32>
    %352 = arith.addf %349, %351 : vector<1x128xf32>
    %353 = vector.broadcast %63 : f32 to vector<1x128xf32>
    %354 = arith.mulf %200, %353 : vector<1x128xf32>
    %355 = arith.addf %352, %354 : vector<1x128xf32>
    %356 = vector.broadcast %64 : f32 to vector<1x128xf32>
    %357 = arith.mulf %208, %356 : vector<1x128xf32>
    %358 = arith.addf %355, %357 : vector<1x128xf32>
    %359 = vector.broadcast %65 : f32 to vector<1x128xf32>
    %360 = arith.mulf %216, %359 : vector<1x128xf32>
    %361 = arith.addf %358, %360 : vector<1x128xf32>
    %362 = vector.broadcast %66 : f32 to vector<1x128xf32>
    %363 = arith.mulf %224, %362 : vector<1x128xf32>
    %364 = arith.addf %361, %363 : vector<1x128xf32>
    %365 = vector.broadcast %67 : f32 to vector<1x128xf32>
    %366 = arith.mulf %232, %365 : vector<1x128xf32>
    %367 = arith.addf %364, %366 : vector<1x128xf32>
    %368 = vector.broadcast %68 : f32 to vector<1x128xf32>
    %369 = arith.mulf %240, %368 : vector<1x128xf32>
    %370 = arith.addf %367, %369 : vector<1x128xf32>
    %371 = vector.broadcast %69 : f32 to vector<1x128xf32>
    %372 = arith.mulf %248, %371 : vector<1x128xf32>
    %373 = arith.addf %370, %372 : vector<1x128xf32>
    %374 = vector.broadcast %133 : f32 to vector<1x128xf32>
    %375 = arith.addf %373, %374 : vector<1x128xf32>
    %376 = math.tanh %375 : vector<1x128xf32>
    %377 = vector.broadcast %70 : f32 to vector<1x128xf32>
    %378 = arith.mulf %176, %377 : vector<1x128xf32>
    %379 = vector.broadcast %71 : f32 to vector<1x128xf32>
    %380 = arith.mulf %184, %379 : vector<1x128xf32>
    %381 = arith.addf %378, %380 : vector<1x128xf32>
    %382 = vector.broadcast %72 : f32 to vector<1x128xf32>
    %383 = arith.mulf %192, %382 : vector<1x128xf32>
    %384 = arith.addf %381, %383 : vector<1x128xf32>
    %385 = vector.broadcast %73 : f32 to vector<1x128xf32>
    %386 = arith.mulf %200, %385 : vector<1x128xf32>
    %387 = arith.addf %384, %386 : vector<1x128xf32>
    %388 = vector.broadcast %74 : f32 to vector<1x128xf32>
    %389 = arith.mulf %208, %388 : vector<1x128xf32>
    %390 = arith.addf %387, %389 : vector<1x128xf32>
    %391 = vector.broadcast %75 : f32 to vector<1x128xf32>
    %392 = arith.mulf %216, %391 : vector<1x128xf32>
    %393 = arith.addf %390, %392 : vector<1x128xf32>
    %394 = vector.broadcast %76 : f32 to vector<1x128xf32>
    %395 = arith.mulf %224, %394 : vector<1x128xf32>
    %396 = arith.addf %393, %395 : vector<1x128xf32>
    %397 = vector.broadcast %77 : f32 to vector<1x128xf32>
    %398 = arith.mulf %232, %397 : vector<1x128xf32>
    %399 = arith.addf %396, %398 : vector<1x128xf32>
    %400 = vector.broadcast %78 : f32 to vector<1x128xf32>
    %401 = arith.mulf %240, %400 : vector<1x128xf32>
    %402 = arith.addf %399, %401 : vector<1x128xf32>
    %403 = vector.broadcast %79 : f32 to vector<1x128xf32>
    %404 = arith.mulf %248, %403 : vector<1x128xf32>
    %405 = arith.addf %402, %404 : vector<1x128xf32>
    %406 = vector.broadcast %134 : f32 to vector<1x128xf32>
    %407 = arith.addf %405, %406 : vector<1x128xf32>
    %408 = math.tanh %407 : vector<1x128xf32>
    %409 = vector.broadcast %80 : f32 to vector<1x128xf32>
    %410 = arith.mulf %176, %409 : vector<1x128xf32>
    %411 = vector.broadcast %81 : f32 to vector<1x128xf32>
    %412 = arith.mulf %184, %411 : vector<1x128xf32>
    %413 = arith.addf %410, %412 : vector<1x128xf32>
    %414 = vector.broadcast %82 : f32 to vector<1x128xf32>
    %415 = arith.mulf %192, %414 : vector<1x128xf32>
    %416 = arith.addf %413, %415 : vector<1x128xf32>
    %417 = vector.broadcast %83 : f32 to vector<1x128xf32>
    %418 = arith.mulf %200, %417 : vector<1x128xf32>
    %419 = arith.addf %416, %418 : vector<1x128xf32>
    %420 = vector.broadcast %84 : f32 to vector<1x128xf32>
    %421 = arith.mulf %208, %420 : vector<1x128xf32>
    %422 = arith.addf %419, %421 : vector<1x128xf32>
    %423 = vector.broadcast %85 : f32 to vector<1x128xf32>
    %424 = arith.mulf %216, %423 : vector<1x128xf32>
    %425 = arith.addf %422, %424 : vector<1x128xf32>
    %426 = vector.broadcast %86 : f32 to vector<1x128xf32>
    %427 = arith.mulf %224, %426 : vector<1x128xf32>
    %428 = arith.addf %425, %427 : vector<1x128xf32>
    %429 = vector.broadcast %87 : f32 to vector<1x128xf32>
    %430 = arith.mulf %232, %429 : vector<1x128xf32>
    %431 = arith.addf %428, %430 : vector<1x128xf32>
    %432 = vector.broadcast %88 : f32 to vector<1x128xf32>
    %433 = arith.mulf %240, %432 : vector<1x128xf32>
    %434 = arith.addf %431, %433 : vector<1x128xf32>
    %435 = vector.broadcast %89 : f32 to vector<1x128xf32>
    %436 = arith.mulf %248, %435 : vector<1x128xf32>
    %437 = arith.addf %434, %436 : vector<1x128xf32>
    %438 = vector.broadcast %135 : f32 to vector<1x128xf32>
    %439 = arith.addf %437, %438 : vector<1x128xf32>
    %440 = math.tanh %439 : vector<1x128xf32>
    %441 = vector.broadcast %90 : f32 to vector<1x128xf32>
    %442 = arith.mulf %176, %441 : vector<1x128xf32>
    %443 = vector.broadcast %91 : f32 to vector<1x128xf32>
    %444 = arith.mulf %184, %443 : vector<1x128xf32>
    %445 = arith.addf %442, %444 : vector<1x128xf32>
    %446 = vector.broadcast %92 : f32 to vector<1x128xf32>
    %447 = arith.mulf %192, %446 : vector<1x128xf32>
    %448 = arith.addf %445, %447 : vector<1x128xf32>
    %449 = vector.broadcast %93 : f32 to vector<1x128xf32>
    %450 = arith.mulf %200, %449 : vector<1x128xf32>
    %451 = arith.addf %448, %450 : vector<1x128xf32>
    %452 = vector.broadcast %94 : f32 to vector<1x128xf32>
    %453 = arith.mulf %208, %452 : vector<1x128xf32>
    %454 = arith.addf %451, %453 : vector<1x128xf32>
    %455 = vector.broadcast %95 : f32 to vector<1x128xf32>
    %456 = arith.mulf %216, %455 : vector<1x128xf32>
    %457 = arith.addf %454, %456 : vector<1x128xf32>
    %458 = vector.broadcast %96 : f32 to vector<1x128xf32>
    %459 = arith.mulf %224, %458 : vector<1x128xf32>
    %460 = arith.addf %457, %459 : vector<1x128xf32>
    %461 = vector.broadcast %97 : f32 to vector<1x128xf32>
    %462 = arith.mulf %232, %461 : vector<1x128xf32>
    %463 = arith.addf %460, %462 : vector<1x128xf32>
    %464 = vector.broadcast %98 : f32 to vector<1x128xf32>
    %465 = arith.mulf %240, %464 : vector<1x128xf32>
    %466 = arith.addf %463, %465 : vector<1x128xf32>
    %467 = vector.broadcast %99 : f32 to vector<1x128xf32>
    %468 = arith.mulf %248, %467 : vector<1x128xf32>
    %469 = arith.addf %466, %468 : vector<1x128xf32>
    %470 = vector.broadcast %136 : f32 to vector<1x128xf32>
    %471 = arith.addf %469, %470 : vector<1x128xf32>
    %472 = math.tanh %471 : vector<1x128xf32>
    %473 = vector.broadcast %100 : f32 to vector<1x128xf32>
    %474 = arith.mulf %176, %473 : vector<1x128xf32>
    %475 = vector.broadcast %101 : f32 to vector<1x128xf32>
    %476 = arith.mulf %184, %475 : vector<1x128xf32>
    %477 = arith.addf %474, %476 : vector<1x128xf32>
    %478 = vector.broadcast %102 : f32 to vector<1x128xf32>
    %479 = arith.mulf %192, %478 : vector<1x128xf32>
    %480 = arith.addf %477, %479 : vector<1x128xf32>
    %481 = vector.broadcast %103 : f32 to vector<1x128xf32>
    %482 = arith.mulf %200, %481 : vector<1x128xf32>
    %483 = arith.addf %480, %482 : vector<1x128xf32>
    %484 = vector.broadcast %104 : f32 to vector<1x128xf32>
    %485 = arith.mulf %208, %484 : vector<1x128xf32>
    %486 = arith.addf %483, %485 : vector<1x128xf32>
    %487 = vector.broadcast %105 : f32 to vector<1x128xf32>
    %488 = arith.mulf %216, %487 : vector<1x128xf32>
    %489 = arith.addf %486, %488 : vector<1x128xf32>
    %490 = vector.broadcast %106 : f32 to vector<1x128xf32>
    %491 = arith.mulf %224, %490 : vector<1x128xf32>
    %492 = arith.addf %489, %491 : vector<1x128xf32>
    %493 = vector.broadcast %107 : f32 to vector<1x128xf32>
    %494 = arith.mulf %232, %493 : vector<1x128xf32>
    %495 = arith.addf %492, %494 : vector<1x128xf32>
    %496 = vector.broadcast %108 : f32 to vector<1x128xf32>
    %497 = arith.mulf %240, %496 : vector<1x128xf32>
    %498 = arith.addf %495, %497 : vector<1x128xf32>
    %499 = vector.broadcast %109 : f32 to vector<1x128xf32>
    %500 = arith.mulf %248, %499 : vector<1x128xf32>
    %501 = arith.addf %498, %500 : vector<1x128xf32>
    %502 = vector.broadcast %137 : f32 to vector<1x128xf32>
    %503 = arith.addf %501, %502 : vector<1x128xf32>
    %504 = math.tanh %503 : vector<1x128xf32>
    %505 = vector.broadcast %110 : f32 to vector<1x128xf32>
    %506 = arith.mulf %176, %505 : vector<1x128xf32>
    %507 = vector.broadcast %111 : f32 to vector<1x128xf32>
    %508 = arith.mulf %184, %507 : vector<1x128xf32>
    %509 = arith.addf %506, %508 : vector<1x128xf32>
    %510 = vector.broadcast %112 : f32 to vector<1x128xf32>
    %511 = arith.mulf %192, %510 : vector<1x128xf32>
    %512 = arith.addf %509, %511 : vector<1x128xf32>
    %513 = vector.broadcast %113 : f32 to vector<1x128xf32>
    %514 = arith.mulf %200, %513 : vector<1x128xf32>
    %515 = arith.addf %512, %514 : vector<1x128xf32>
    %516 = vector.broadcast %114 : f32 to vector<1x128xf32>
    %517 = arith.mulf %208, %516 : vector<1x128xf32>
    %518 = arith.addf %515, %517 : vector<1x128xf32>
    %519 = vector.broadcast %115 : f32 to vector<1x128xf32>
    %520 = arith.mulf %216, %519 : vector<1x128xf32>
    %521 = arith.addf %518, %520 : vector<1x128xf32>
    %522 = vector.broadcast %116 : f32 to vector<1x128xf32>
    %523 = arith.mulf %224, %522 : vector<1x128xf32>
    %524 = arith.addf %521, %523 : vector<1x128xf32>
    %525 = vector.broadcast %117 : f32 to vector<1x128xf32>
    %526 = arith.mulf %232, %525 : vector<1x128xf32>
    %527 = arith.addf %524, %526 : vector<1x128xf32>
    %528 = vector.broadcast %118 : f32 to vector<1x128xf32>
    %529 = arith.mulf %240, %528 : vector<1x128xf32>
    %530 = arith.addf %527, %529 : vector<1x128xf32>
    %531 = vector.broadcast %119 : f32 to vector<1x128xf32>
    %532 = arith.mulf %248, %531 : vector<1x128xf32>
    %533 = arith.addf %530, %532 : vector<1x128xf32>
    %534 = vector.broadcast %138 : f32 to vector<1x128xf32>
    %535 = arith.addf %533, %534 : vector<1x128xf32>
    %536 = math.tanh %535 : vector<1x128xf32>
    %537 = vector.broadcast %120 : f32 to vector<1x128xf32>
    %538 = arith.mulf %176, %537 : vector<1x128xf32>
    %539 = vector.broadcast %121 : f32 to vector<1x128xf32>
    %540 = arith.mulf %184, %539 : vector<1x128xf32>
    %541 = arith.addf %538, %540 : vector<1x128xf32>
    %542 = vector.broadcast %122 : f32 to vector<1x128xf32>
    %543 = arith.mulf %192, %542 : vector<1x128xf32>
    %544 = arith.addf %541, %543 : vector<1x128xf32>
    %545 = vector.broadcast %123 : f32 to vector<1x128xf32>
    %546 = arith.mulf %200, %545 : vector<1x128xf32>
    %547 = arith.addf %544, %546 : vector<1x128xf32>
    %548 = vector.broadcast %124 : f32 to vector<1x128xf32>
    %549 = arith.mulf %208, %548 : vector<1x128xf32>
    %550 = arith.addf %547, %549 : vector<1x128xf32>
    %551 = vector.broadcast %125 : f32 to vector<1x128xf32>
    %552 = arith.mulf %216, %551 : vector<1x128xf32>
    %553 = arith.addf %550, %552 : vector<1x128xf32>
    %554 = vector.broadcast %126 : f32 to vector<1x128xf32>
    %555 = arith.mulf %224, %554 : vector<1x128xf32>
    %556 = arith.addf %553, %555 : vector<1x128xf32>
    %557 = vector.broadcast %127 : f32 to vector<1x128xf32>
    %558 = arith.mulf %232, %557 : vector<1x128xf32>
    %559 = arith.addf %556, %558 : vector<1x128xf32>
    %560 = vector.broadcast %128 : f32 to vector<1x128xf32>
    %561 = arith.mulf %240, %560 : vector<1x128xf32>
    %562 = arith.addf %559, %561 : vector<1x128xf32>
    %563 = vector.broadcast %129 : f32 to vector<1x128xf32>
    %564 = arith.mulf %248, %563 : vector<1x128xf32>
    %565 = arith.addf %562, %564 : vector<1x128xf32>
    %566 = vector.broadcast %139 : f32 to vector<1x128xf32>
    %567 = arith.addf %565, %566 : vector<1x128xf32>
    %568 = math.tanh %567 : vector<1x128xf32>
    %569 = vector.broadcast %140 : f32 to vector<1x128xf32>
    %570 = arith.mulf %280, %569 : vector<1x128xf32>
    %571 = vector.broadcast %141 : f32 to vector<1x128xf32>
    %572 = arith.mulf %312, %571 : vector<1x128xf32>
    %573 = arith.addf %570, %572 : vector<1x128xf32>
    %574 = vector.broadcast %142 : f32 to vector<1x128xf32>
    %575 = arith.mulf %344, %574 : vector<1x128xf32>
    %576 = arith.addf %573, %575 : vector<1x128xf32>
    %577 = vector.broadcast %143 : f32 to vector<1x128xf32>
    %578 = arith.mulf %376, %577 : vector<1x128xf32>
    %579 = arith.addf %576, %578 : vector<1x128xf32>
    %580 = vector.broadcast %144 : f32 to vector<1x128xf32>
    %581 = arith.mulf %408, %580 : vector<1x128xf32>
    %582 = arith.addf %579, %581 : vector<1x128xf32>
    %583 = vector.broadcast %145 : f32 to vector<1x128xf32>
    %584 = arith.mulf %440, %583 : vector<1x128xf32>
    %585 = arith.addf %582, %584 : vector<1x128xf32>
    %586 = vector.broadcast %146 : f32 to vector<1x128xf32>
    %587 = arith.mulf %472, %586 : vector<1x128xf32>
    %588 = arith.addf %585, %587 : vector<1x128xf32>
    %589 = vector.broadcast %147 : f32 to vector<1x128xf32>
    %590 = arith.mulf %504, %589 : vector<1x128xf32>
    %591 = arith.addf %588, %590 : vector<1x128xf32>
    %592 = vector.broadcast %148 : f32 to vector<1x128xf32>
    %593 = arith.mulf %536, %592 : vector<1x128xf32>
    %594 = arith.addf %591, %593 : vector<1x128xf32>
    %595 = vector.broadcast %149 : f32 to vector<1x128xf32>
    %596 = arith.mulf %568, %595 : vector<1x128xf32>
    %597 = arith.addf %594, %596 : vector<1x128xf32>
    %598 = vector.broadcast %160 : f32 to vector<1x128xf32>
    %599 = arith.addf %597, %598 : vector<1x128xf32>
    %600 = math.tanh %599 : vector<1x128xf32>
    %601 = vector.broadcast %150 : f32 to vector<1x128xf32>
    %602 = arith.mulf %280, %601 : vector<1x128xf32>
    %603 = vector.broadcast %151 : f32 to vector<1x128xf32>
    %604 = arith.mulf %312, %603 : vector<1x128xf32>
    %605 = arith.addf %602, %604 : vector<1x128xf32>
    %606 = vector.broadcast %152 : f32 to vector<1x128xf32>
    %607 = arith.mulf %344, %606 : vector<1x128xf32>
    %608 = arith.addf %605, %607 : vector<1x128xf32>
    %609 = vector.broadcast %153 : f32 to vector<1x128xf32>
    %610 = arith.mulf %376, %609 : vector<1x128xf32>
    %611 = arith.addf %608, %610 : vector<1x128xf32>
    %612 = vector.broadcast %154 : f32 to vector<1x128xf32>
    %613 = arith.mulf %408, %612 : vector<1x128xf32>
    %614 = arith.addf %611, %613 : vector<1x128xf32>
    %615 = vector.broadcast %155 : f32 to vector<1x128xf32>
    %616 = arith.mulf %440, %615 : vector<1x128xf32>
    %617 = arith.addf %614, %616 : vector<1x128xf32>
    %618 = vector.broadcast %156 : f32 to vector<1x128xf32>
    %619 = arith.mulf %472, %618 : vector<1x128xf32>
    %620 = arith.addf %617, %619 : vector<1x128xf32>
    %621 = vector.broadcast %157 : f32 to vector<1x128xf32>
    %622 = arith.mulf %504, %621 : vector<1x128xf32>
    %623 = arith.addf %620, %622 : vector<1x128xf32>
    %624 = vector.broadcast %158 : f32 to vector<1x128xf32>
    %625 = arith.mulf %536, %624 : vector<1x128xf32>
    %626 = arith.addf %623, %625 : vector<1x128xf32>
    %627 = vector.broadcast %159 : f32 to vector<1x128xf32>
    %628 = arith.mulf %568, %627 : vector<1x128xf32>
    %629 = arith.addf %626, %628 : vector<1x128xf32>
    %630 = vector.broadcast %161 : f32 to vector<1x128xf32>
    %631 = arith.addf %629, %630 : vector<1x128xf32>
    %632 = math.tanh %631 : vector<1x128xf32>
    %c0_26 = arith.constant 0 : index
    %633 = arith.index_cast %162 : i32 to index
    %c0_27 = arith.constant 0 : index
    %634 = vector.load %arg4[%c0_26, %633, %c0_27] : memref<2x1x128xf32, #tpu.memory_space<vmem>>, vector<1x1x128xf32>
    %635 = vector.shape_cast %634 : vector<1x1x128xf32> to vector<1x128xf32>
    %636 = vector.shape_cast %600 : vector<1x128xf32> to vector<1x1x128xf32>
    tpu.vector_store %arg4[%c0_26, %633, %c0_27], %636 {strides = array<i32>} : memref<2x1x128xf32, #tpu.memory_space<vmem>>, vector<1x1x128xf32>,
    %c1_28 = arith.constant 1 : index
    %637 = arith.index_cast %162 : i32 to index
    %c0_29 = arith.constant 0 : index
    %638 = vector.load %arg4[%c1_28, %637, %c0_29] : memref<2x1x128xf32, #tpu.memory_space<vmem>>, vector<1x1x128xf32>
    %639 = vector.shape_cast %638 : vector<1x1x128xf32> to vector<1x128xf32>
    %640 = vector.shape_cast %632 : vector<1x128xf32> to vector<1x1x128xf32>
    tpu.vector_store %arg4[%c1_28, %637, %c0_29], %640 {strides = array<i32>} : memref<2x1x128xf32, #tpu.memory_space<vmem>>, vector<1x1x128xf32>,
    return
  }
  func.func @transform_0(%arg0: i32) -> i32 {
    %c0_i32 = arith.constant 0 : i32
    %c0_i32_0 = arith.constant 0 : i32
    return %c0_i32 : i32
  }
  func.func @transform_1(%arg0: i32) -> i32 {
    %c0_i32 = arith.constant 0 : i32
    %c0_i32_0 = arith.constant 0 : i32
    return %c0_i32 : i32
  }
  func.func @transform_2(%arg0: i32) -> (i32, i32, i32) {
    %c0_i32 = arith.constant 0 : i32
    %c0_i32_0 = arith.constant 0 : i32
    %c0_i32_1 = arith.constant 0 : i32
    return %c0_i32, %arg0, %c0_i32_0 : i32, i32, i32
  }
  func.func @transform_3(%arg0: i32) -> (i32, i32, i32) {
    %c0_i32 = arith.constant 0 : i32
    %c0_i32_0 = arith.constant 0 : i32
    %c0_i32_1 = arith.constant 0 : i32
    return %c0_i32, %arg0, %c0_i32_0 : i32, i32, i32
  }
}

</mosaic_0001>

<bundles_post_ra>
// kernel: tpu_custom_call.1
= control target key start
LH: loop header
LB: loop body
LE: loop exit
PB: predicated region body
PF: predicated region fallthrough
CT: control target
= control target key end

     0   :  { %8 = vsyncpa [#allocation4], 0  ;;  %s1650_s0 = inlined_call_operand.hbm [shape: f32[140], index: 0, kind: input, shape index: {}]   ;;  %s1651_s1 = inlined_call_operand.vmem [shape: f32[22], index: 1, kind: input, shape index: {}]   ;;  %s1652_s2 = inlined_call_operand.vmem [shape: f32[2,1,128], index: 2, kind: input, shape index: {}]   ;;  %s1653_s3 = inlined_call_operand.hbm [shape: f32[2,1,128], index: 3, kind: output, shape index: {}]  }
   0x1   :  { %9 = vsyncpa [#allocation5], 0 }
   0x2   :  { %10 = vsyncpa [#allocation3], 0  ;;  %s25_s14 = sshll.u32 %s1651_s1, 4  ;;  %s901_s17 = scalar_lea.hbm %s1650_s0, 32  ;;  %s26_s14 = int_to_ptr.vmem [resolvable:$true] %s25_s14 }
   0x3   :  { %p902_p0 = scmp.ne.s32.totalorder %s1650_s0, %s901_s17  ;;  %p905_p1 = scmp.lt.u32.totalorder %s901_s17, %s1650_s0 }
   0x5   :  { %p907_p2 = pnand %p905_p1, %p902_p0 }
   0x7   :  { %910 = shalt.err (!%p907_p2)
}
   0x8   :  { %s951_s22 = smov [#allocation2]   ;;  %s911_s1 = scalar_lea.vmem %s26_s14, 16 }
   0x9   :  { %18 = dma.hbm_to_smem %s1650_s0, 32, %s951_s22, [#allocation4]  }
   0xa   :  { %p912_p3 = scmp.ne.s32.totalorder %s26_s14, %s911_s1  ;;  %p916_p4 = scmp.lt.s32.totalorder %s26_s14, %s26_s14 }
   0xb   :  { %p917_p5 = scmp.lt.s32.totalorder %s911_s1, %s911_s1 }
   0xd   :  { %p918_p6 = por %p917_p5, %p916_p4 }
   0xf   :  { %p919_p7 = pnand %p918_p6, %p912_p3 }
  0x11   :  { %922 = shalt.err (!%p919_p7)
}
  0x12   :  { %s952_s25 = smov [#allocation6]  }
  0x13   :  { %28 = dma.vmem_to_smem %s26_s14, 16, %s952_s25, [#allocation5]  }
  0x14   :  { %945 = dma.done.wait [#allocation4], 32  }
  0x15   :  { %946 = vsyncadd [#allocation4], 4294967264 }
  0x16   :  { %947 = dma.done.wait [#allocation5], 16  }
  0x17   :  { %948 = vsyncadd [#allocation5], 4294967280 }
  0x18   :  { %37 = sfence }
  0x19   :  { %s38_s26 = sld [smem:[#allocation2]]  ;;  %s691_s27 = sld [smem:[#allocation2 + $0x1]]  ;;  %v998_v0 = vld [vmem:[%s1652_s2] sm:$0x1]  ;;  %v1007_v1 = vld [vmem:[%s1652_s2 + $0x1] sm:$0x1] }
  0x1a   :  { %s692_s28 = sld [smem:[#allocation2 + $0x2]]  ;;  %s693_s29 = sld [smem:[#allocation2 + $0x3]] }
  0x1b   :  { %s694_s0 = sld [smem:[#allocation2 + $0x4]]  ;;  %s695_s30 = sld [smem:[#allocation2 + $0x5]] }
  0x1c   :  { %s991_s4 = sld [smem:[#allocation2 + $0x6]]  ;;  %s993_s5 = sld [smem:[#allocation2 + $0x7]] }
  0x1d   :  { %s1000_s8 = sld [smem:[#allocation2 + $0x8]]  ;;  %s1002_s9 = sld [smem:[#allocation2 + $0x9]] }
  0x1e   :  { %s1009_s12 = sld [smem:[#allocation2 + $0xa]]  ;;  %s1011_s13 = sld [smem:[#allocation2 + $0xb]] }
  0x1f   :  { %s1013_s14 = sld [smem:[#allocation2 + $0xc]]  ;;  %s1015_s15 = sld [smem:[#allocation2 + $0xd]]  ;;  %v204_v2 = vstv %s38_s26  ;;  %v206_v3 = vstv %s691_s27 }
  0x20   :  { %s1017_s16 = sld [smem:[#allocation2 + $0xe]]  ;;  %s1019_s17 = sld [smem:[#allocation2 + $0xf]]  ;;  %v205_v4 = vmul.f32 %v204_v2, %v998_v0  ;;  %v207_v5 = vmul.f32 %v1007_v1, %v206_v3  ;;  %v212_v6 = vstv %s692_s28  ;;  %v214_v7 = vstv %s693_s29 }
  0x21   :  { %s1023_s2 = sld [smem:[#allocation2 + $0x10]]  ;;  %s1025_s18 = sld [smem:[#allocation2 + $0x11]]  ;;  %v213_v8 = vmul.f32 %v212_v6, %v998_v0  ;;  %v215_v9 = vmul.f32 %v1007_v1, %v214_v7  ;;  %v220_v10 = vstv %s694_s0  ;;  %v222_v11 = vstv %s695_s30 }
  0x22   :  { %v208_v12 = vadd.f32 %v207_v5, %v205_v4  ;;  %v221_v13 = vmul.f32 %v220_v10, %v998_v0  ;;  %v223_v14 = vmul.f32 %v1007_v1, %v222_v11  ;;  %v228_v15 = vstv %s991_s4  ;;  %s1032_s19 = sld [smem:[#allocation6]]  ;;  %s1034_s20 = sld [smem:[#allocation6 + $0x1]] }
  0x23   :  { %v216_v16 = vadd.f32 %v215_v9, %v213_v8  ;;  %v229_v17 = vmul.f32 %v228_v15, %v998_v0  ;;  %v230_v18 = vstv %s993_s5  ;;  %v236_v19 = vstv %s1000_s8  ;;  %s1039_s21 = sld [smem:[#allocation6 + $0x2]]  ;;  %s1041_s22 = sld [smem:[#allocation6 + $0x3]] }
  0x24   :  { %v224_v20 = vadd.f32 %v223_v14, %v221_v13  ;;  %v231_v21 = vmul.f32 %v1007_v1, %v230_v18  ;;  %v237_v22 = vmul.f32 %v236_v19, %v998_v0  ;;  %v238_v23 = vstv %s1002_s9  ;;  %s1046_s23 = sld [smem:[#allocation6 + $0x4]]  ;;  %s1048_s24 = sld [smem:[#allocation6 + $0x5]] }
  0x25   :  { %v239_v24 = vmul.f32 %v1007_v1, %v238_v23  ;;  %v244_v25 = vstv %s1009_s12  ;;  %v246_v26 = vstv %s1011_s13  ;;  %v252_v27 = vstv %s1013_s14  ;;  %s1054_s1 = sld [smem:[#allocation6 + $0x6]]  ;;  %s1056_s25 = sld [smem:[#allocation6 + $0x7]] }
  0x26   :  { %v232_v28 = vadd.f32 %v231_v21, %v229_v17  ;;  %v245_v29 = vmul.f32 %v244_v25, %v998_v0  ;;  %v247_v30 = vmul.f32 %v1007_v1, %v246_v26  ;;  %v253_v31 = vmul.f32 %v252_v27, %v998_v0  ;;  %s1061_s26 = sld [smem:[#allocation2 + $0x12]]  ;;  %s1063_s27 = sld [smem:[#allocation6 + $0x8]] }
  0x27   :  { %v240_v32 = vadd.f32 %v239_v24, %v237_v22  ;;  %v254_v33 = vstv %s1015_s15  ;;  %v260_v34 = vstv %s1017_s16  ;;  %v262_v35 = vstv %s1019_s17  ;;  %s1068_s28 = sld [smem:[#allocation2 + $0x13]]  ;;  %s1073_s29 = sld [smem:[#allocation6 + $0x9]] }
  0x28   :  { %v248_v36 = vadd.f32 %v247_v30, %v245_v29  ;;  %v255_v37 = vmul.f32 %v1007_v1, %v254_v33  ;;  %v261_v38 = vmul.f32 %v260_v34, %v998_v0  ;;  %v263_v39 = vmul.f32 %v1007_v1, %v262_v35  ;;  %s1075_s0 = sld [smem:[#allocation2 + $0x14]]  ;;  %s1081_s30 = sld [smem:[#allocation2 + $0x15]] }
  0x29   :  { %v209_v40 = vstv %s1032_s19  ;;  %v217_v41 = vstv %s1034_s20  ;;  %v268_v42 = vstv %s1023_s2  ;;  %v270_v43 = vstv %s1025_s18  ;;  %s1083_s4 = sld [smem:[#allocation2 + $0x16]]  ;;  %s1087_s5 = sld [smem:[#allocation2 + $0x17]] }
  0x2a   :  { %v210_v44 = vadd.f32 %v209_v40, %v208_v12  ;;  %v218_v45 = vadd.f32 %v217_v41, %v216_v16  ;;  %v225_v46 = vstv %s1039_s21  ;;  %v233_v47 = vstv %s1041_s22  ;;  %s1089_s6 = sld [smem:[#allocation2 + $0x18]]  ;;  %s1093_s7 = sld [smem:[#allocation2 + $0x19]] }
  0x2b   :  { %v226_v48 = vadd.f32 %v225_v46, %v224_v20  ;;  %v234_v49 = vadd.f32 %v233_v47, %v232_v28  ;;  %v241_v50 = vstv %s1046_s23  ;;  %v249_v51 = vstv %s1048_s24  ;;  %s1095_s8 = sld [smem:[#allocation2 + $0x1a]]  ;;  %s1097_s9 = sld [smem:[#allocation2 + $0x1b]] }
  0x2c   :  { %857 = vtanh.f32 %v210_v44  ;;  %v242_v52 = vadd.f32 %v241_v50, %v240_v32  ;;  %v250_v53 = vadd.f32 %v249_v51, %v248_v36  ;;  %v256_v54 = vadd.f32 %v255_v37, %v253_v31  ;;  %s1099_s10 = sld [smem:[#allocation2 + $0x1e]]  ;;  %s1103_s11 = sld [smem:[#allocation2 + $0x1f]] }
  0x2d   :  { %859 = vtanh.f32 %v218_v45  ;;  %v257_v55 = vstv %s1054_s1  ;;  %v264_v56 = vadd.f32 %v263_v39, %v261_v38  ;;  %v265_v57 = vstv %s1056_s25  ;;  %s1105_s12 = sld [smem:[#allocation2 + $0x20]]  ;;  %s1109_s13 = sld [smem:[#allocation2 + $0x21]] }
  0x2e   :  { %861 = vtanh.f32 %v226_v48  ;;  %v258_v58 = vadd.f32 %v257_v55, %v256_v54  ;;  %v269_v59 = vmul.f32 %v268_v42, %v998_v0  ;;  %v271_v60 = vmul.f32 %v1007_v1, %v270_v43  ;;  %s1113_s14 = sld [smem:[#allocation2 + $0x1c]]  ;;  %s1115_s15 = sld [smem:[#allocation2 + $0x1d]] }
  0x2f   :  { %863 = vtanh.f32 %v234_v49  ;;  %v266_v61 = vadd.f32 %v265_v57, %v264_v56  ;;  %v273_v62 = vstv %s1063_s27  ;;  %v276_v63 = vstv %s1061_s26  ;;  %s1119_s16 = sld [smem:[#allocation2 + $0x22]]  ;;  %s1121_s17 = sld [smem:[#allocation2 + $0x23]] }
  0x30   :  { %865 = vtanh.f32 %v242_v52  ;;  %v272_v2 = vadd.f32 %v271_v60, %v269_v59  ;;  %v277_v3 = vmul.f32 %v276_v63, %v998_v0  ;;  %v278_v4 = vstv %s1068_s28  ;;  %s1124_s2 = sld [smem:[#allocation2 + $0x24]]  ;;  %s1126_s18 = sld [smem:[#allocation2 + $0x25]] }
  0x31   :  { %867 = vtanh.f32 %v250_v53  ;;  %v279_v5 = vmul.f32 %v1007_v1, %v278_v4  ;;  %v281_v0 = vstv %s1073_s29  ;;  %s1129_s19 = sld [smem:[#allocation2 + $0x28]]  ;;  %s1131_s20 = sld [smem:[#allocation2 + $0x29]]  ;;  %v284_v8 = vstv %s1075_s0 }
  0x32   :  { %869 = vtanh.f32 %v258_v58  ;;  %v274_v6 = vadd.f32 %v273_v62, %v272_v2  ;;  %v286_v1 = vstv %s1081_s30  ;;  %v289_v9 = vstv %s1083_s4  ;;  %s1138_s21 = sld [smem:[#allocation2 + $0x26]]  ;;  %s1140_s22 = sld [smem:[#allocation2 + $0x27]] }
  0x33   :  { %v280_v7 = vadd.f32 %v279_v5, %v277_v3  ;;  %871 = vtanh.f32 %v266_v61  ;;  %v292_v10 = vstv %s1087_s5  ;;  %v295_v11 = vstv %s1089_s6  ;;  %s1152_s23 = sld [smem:[#allocation2 + $0x2a]]  ;;  %s1159_s24 = sld [smem:[#allocation2 + $0x2b]] }
  0x34   :  { %873 = vtanh.f32 %v274_v6  ;;  %v298_v13 = vstv %s1093_s7  ;;  %v316_v14 = vstv %s1099_s10  ;;  %v301_v16 = vstv %s1095_s8  ;;  %s1167_s1 = sld [smem:[#allocation2 + $0x2c]]  ;;  %s1175_s25 = sld [smem:[#allocation2 + $0x2d]] }
  0x35   :  { %v282_v12 = vadd.f32 %v281_v0, %v280_v7  ;;  %v304_v17 = vstv %s1097_s9  ;;  %v318_v18 = vstv %s1103_s11  ;;  %v321_v19 = vstv %s1105_s12  ;;  %s1177_s26 = sld [smem:[#allocation2 + $0x2e]]  ;;  %s1189_s27 = sld [smem:[#allocation2 + $0x2f]] }
  0x36   :  { %v1144_v15 = vpop.eup %857  ;;  %v324_v23 = vstv %s1109_s13  ;;  %v307_v26 = vstv %s1113_s14  ;;  %v310_v27 = vstv %s1115_s15  ;;  %v327_v32 = vstv %s1119_s16  ;;  %s1193_s28 = sld [smem:[#allocation2 + $0x30]]  ;;  %s1201_s29 = sld [smem:[#allocation2 + $0x32]] }
  0x37   :  { %v1150_v20 = vpop.eup %859  ;;  %875 = vtanh.f32 %v282_v12  ;;  %v285_v21 = vmul.f32 %v1144_v15, %v284_v8  ;;  %v317_v22 = vmul.f32 %v1144_v15, %v316_v14  ;;  %v330_v33 = vstv %s1121_s17  ;;  %s1207_s0 = sld [smem:[#allocation2 + $0x33]]  ;;  %s1209_s30 = sld [smem:[#allocation2 + $0x34]] }
  0x38   :  { %v1157_v24 = vpop.eup %861  ;;  %v287_v25 = vmul.f32 %v1150_v20, %v286_v1  ;;  %v319_v28 = vmul.f32 %v1150_v20, %v318_v18  ;;  %v333_v40 = vstv %s1124_s2  ;;  %v336_v41 = vstv %s1126_s18  ;;  %s1214_s4 = sld [smem:[#allocation2 + $0x31]]  ;;  %s1216_s5 = sld [smem:[#allocation2 + $0x35]] }
  0x39   :  { %v1165_v29 = vpop.eup %863  ;;  %v290_v30 = vmul.f32 %v1157_v24, %v289_v9  ;;  %v322_v31 = vmul.f32 %v1157_v24, %v321_v19  ;;  %v348_v42 = vstv %s1129_s19  ;;  %v350_v43 = vstv %s1131_s20  ;;  %s1222_s6 = sld [smem:[#allocation2 + $0x36]]  ;;  %s1224_s7 = sld [smem:[#allocation2 + $0x37]] }
  0x3a   :  { %v1173_v34 = vpop.eup %865  ;;  %v288_v35 = vadd.f32 %v287_v25, %v285_v21  ;;  %v293_v36 = vmul.f32 %v1165_v29, %v292_v10  ;;  %v320_v37 = vadd.f32 %v319_v28, %v317_v22  ;;  %v325_v38 = vmul.f32 %v1165_v29, %v324_v23  ;;  %s1234_s8 = sld [smem:[#allocation2 + $0x38]]  ;;  %s1241_s9 = sld [smem:[#allocation2 + $0x39]] }
  0x3b   :  { %v1181_v39 = vpop.eup %867  ;;  %v296_v46 = vmul.f32 %v1173_v34, %v295_v11  ;;  %v328_v48 = vmul.f32 %v1173_v34, %v327_v32  ;;  %v339_v49 = vstv %s1138_s21  ;;  %v342_v50 = vstv %s1140_s22  ;;  %s1247_s10 = sld [smem:[#allocation2 + $0x3a]]  ;;  %s1249_s11 = sld [smem:[#allocation2 + $0x3b]] }
  0x3c   :  { %v1187_v44 = vpop.eup %869  ;;  %v291_v45 = vadd.f32 %v290_v30, %v288_v35  ;;  %v323_v47 = vadd.f32 %v322_v31, %v320_v37  ;;  %v349_v51 = vmul.f32 %v1144_v15, %v348_v42  ;;  %v351_v52 = vmul.f32 %v1150_v20, %v350_v43  ;;  %s1254_s12 = sld [smem:[#allocation2 + $0x3c]]  ;;  %s1256_s13 = sld [smem:[#allocation2 + $0x3d]] }
  0x3d   :  { %v1199_v53 = vpop.eup %871  ;;  %v299_v55 = vmul.f32 %v1181_v39, %v298_v13  ;;  %v331_v57 = vmul.f32 %v1181_v39, %v330_v33  ;;  %v302_v59 = vmul.f32 %v1187_v44, %v301_v16  ;;  %v334_v60 = vmul.f32 %v1187_v44, %v333_v40  ;;  %s1260_s14 = sld [smem:[#allocation2 + $0x3e]]  ;;  %s1265_s15 = sld [smem:[#allocation2 + $0x3f]] }
  0x3e   :  { %v294_v54 = vadd.f32 %v293_v36, %v291_v45  ;;  %v326_v56 = vadd.f32 %v325_v38, %v323_v47  ;;  %v1205_v58 = vpop.eup %873  ;;  %v352_v61 = vadd.f32 %v351_v52, %v349_v51  ;;  %v353_v62 = vstv %s1152_s23  ;;  %s1267_s16 = sld [smem:[#allocation2 + $0x40]]  ;;  %s1275_s17 = sld [smem:[#allocation2 + $0x41]] }
  0x3f   :  { %v354_v3 = vmul.f32 %v1157_v24, %v353_v62  ;;  %v356_v4 = vstv %s1159_s24  ;;  %v305_v6 = vmul.f32 %v1199_v53, %v304_v17  ;;  %v337_v0 = vmul.f32 %v1199_v53, %v336_v41  ;;  %s1277_s2 = sld [smem:[#allocation2 + $0x42]]  ;;  %s1286_s18 = sld [smem:[#allocation2 + $0x43]] }
  0x40   :  { %v297_v63 = vadd.f32 %v296_v46, %v294_v54  ;;  %v329_v2 = vadd.f32 %v328_v48, %v326_v56  ;;  %v357_v7 = vmul.f32 %v1165_v29, %v356_v4  ;;  %v359_v8 = vstv %s1167_s1  ;;  %s1288_s19 = sld [smem:[#allocation2 + $0x46]]  ;;  %s1294_s20 = sld [smem:[#allocation2 + $0x44]] }
  0x41   :  { %v1220_v5 = vpop.eup %875  ;;  %v362_v10 = vstv %s1175_s25  ;;  %v365_v11 = vstv %s1177_s26  ;;  %v308_v12 = vmul.f32 %v1205_v58, %v307_v26  ;;  %v340_v13 = vmul.f32 %v1205_v58, %v339_v49  ;;  %s1296_s21 = sld [smem:[#allocation2 + $0x47]]  ;;  %s1301_s22 = sld [smem:[#allocation2 + $0x48]] }
  0x42   :  { %v300_v1 = vadd.f32 %v299_v55, %v297_v63  ;;  %v332_v9 = vadd.f32 %v331_v57, %v329_v2  ;;  %v355_v14 = vadd.f32 %v354_v3, %v352_v61  ;;  %v360_v16 = vmul.f32 %v1173_v34, %v359_v8  ;;  %s1303_s23 = sld [smem:[#allocation2 + $0x49]]  ;;  %s1308_s24 = sld [smem:[#allocation2 + $0x45]] }
  0x43   :  { %v311_v18 = vmul.f32 %v1220_v5, %v310_v27  ;;  %v368_v21 = vstv %s1189_s27  ;;  %v363_v23 = vmul.f32 %v1181_v39, %v362_v10  ;;  %v366_v25 = vmul.f32 %v1187_v44, %v365_v11  ;;  %s1313_s1 = sld [smem:[#allocation2 + $0x4a]]  ;;  %s1315_s25 = sld [smem:[#allocation2 + $0x4b]] }
  0x44   :  { %v303_v17 = vadd.f32 %v302_v59, %v300_v1  ;;  %v335_v19 = vadd.f32 %v334_v60, %v332_v9  ;;  %v358_v22 = vadd.f32 %v357_v7, %v355_v14  ;;  %v371_v26 = vstv %s1193_s28  ;;  %s1320_s26 = sld [smem:[#allocation2 + $0x4c]]  ;;  %s1329_s27 = sld [smem:[#allocation2 + $0x4d]] }
  0x45   :  { %v369_v30 = vmul.f32 %v1199_v53, %v368_v21  ;;  %v380_v31 = vstv %s1201_s29  ;;  %v382_v35 = vstv %s1207_s0  ;;  %v385_v36 = vstv %s1209_s30  ;;  %s1331_s28 = sld [smem:[#allocation2 + $0x50]]  ;;  %s1337_s29 = sld [smem:[#allocation2 + $0x51]] }
  0x46   :  { %v306_v27 = vadd.f32 %v305_v6, %v303_v17  ;;  %v338_v28 = vadd.f32 %v337_v0, %v335_v19  ;;  %v361_v32 = vadd.f32 %v360_v16, %v358_v22  ;;  %v381_v33 = vmul.f32 %v1144_v15, %v380_v31  ;;  %s1339_s0 = sld [smem:[#allocation2 + $0x52]]  ;;  %s1344_s30 = sld [smem:[#allocation2 + $0x4e]] }
  0x47   :  { %v374_v38 = vstv %s1214_s4  ;;  %v383_v40 = vmul.f32 %v1150_v20, %v382_v35  ;;  %v386_v41 = vmul.f32 %v1157_v24, %v385_v36  ;;  %v388_v43 = vstv %s1216_s5  ;;  %s1349_s4 = sld [smem:[#allocation2 + $0x4f]]  ;;  %s1351_s5 = sld [smem:[#allocation2 + $0x53]] }
  0x48   :  { %v309_v37 = vadd.f32 %v308_v12, %v306_v27  ;;  %v364_v42 = vadd.f32 %v363_v23, %v361_v32  ;;  %v391_v45 = vstv %s1222_s6  ;;  %v394_v46 = vstv %s1224_s7  ;;  %s1356_s6 = sld [smem:[#allocation2 + $0x54]]  ;;  %s1364_s7 = sld [smem:[#allocation2 + $0x55]] }
  0x49   :  { %v343_v47 = vmul.f32 %v1220_v5, %v342_v50  ;;  %v372_v48 = vmul.f32 %v1205_v58, %v371_v26  ;;  %v384_v49 = vadd.f32 %v383_v40, %v381_v33  ;;  %v389_v51 = vmul.f32 %v1165_v29, %v388_v43 }
  0x4a   :  { %v341_v52 = vadd.f32 %v340_v13, %v338_v28  ;;  %v367_v54 = vadd.f32 %v366_v25, %v364_v42  ;;  %v375_v55 = vmul.f32 %v1220_v5, %v374_v38  ;;  %v397_v56 = vstv %s1234_s8  ;;  %s1368_s8 = sld [smem:[#allocation6 + $0xa]] }
  0x4b   :  { %v1290_v50 = vadd.f32 %v311_v18, %v309_v37  ;;  %v387_v57 = vadd.f32 %v386_v41, %v384_v49  ;;  %v392_v59 = vmul.f32 %v1173_v34, %v391_v45  ;;  %v395_v60 = vmul.f32 %v1181_v39, %v394_v46 }
  0x4c   :  { %v370_v61 = vadd.f32 %v369_v30, %v367_v54  ;;  %v398_v62 = vmul.f32 %v1187_v44, %v397_v56  ;;  %v400_v63 = vstv %s1241_s9  ;;  %v403_v2 = vstv %s1247_s10  ;;  %s1370_s9 = sld [smem:[#allocation6 + $0xb]]  ;;  %s1376_s10 = sld [smem:[#allocation6 + $0xc]] }
  0x4d   :  { %v390_v3 = vadd.f32 %v389_v51, %v387_v57  ;;  %v406_v4 = vstv %s1249_s11  ;;  %v412_v6 = vstv %s1254_s12  ;;  %v414_v0 = vstv %s1256_s13  ;;  %s1378_s11 = sld [smem:[#allocation6 + $0xd]]  ;;  %s1381_s12 = sld [smem:[#allocation2 + $0x56]] }
  0x4e   :  { %v373_v7 = vadd.f32 %v372_v48, %v370_v61  ;;  %v413_v8 = vmul.f32 %v1144_v15, %v412_v6  ;;  %v415_v1 = vmul.f32 %v1150_v20, %v414_v0  ;;  %v417_v9 = vstv %s1260_s14  ;;  %s1383_s13 = sld [smem:[#allocation6 + $0xe]]  ;;  %s1391_s14 = sld [smem:[#allocation2 + $0x57]] }
  0x4f   :  { %v393_v10 = vadd.f32 %v392_v59, %v390_v3  ;;  %v418_v11 = vmul.f32 %v1157_v24, %v417_v9  ;;  %v420_v12 = vstv %s1265_s15  ;;  %v423_v13 = vstv %s1267_s16  ;;  %s1393_s15 = sld [smem:[#allocation6 + $0xf]]  ;;  %s1399_s16 = sld [smem:[#allocation2 + $0x58]] }
  0x50   :  { %v1322_v14 = vadd.f32 %v343_v47, %v341_v52  ;;  %v401_v16 = vmul.f32 %v1199_v53, %v400_v63  ;;  %v416_v17 = vadd.f32 %v415_v1, %v413_v8  ;;  %v421_v18 = vmul.f32 %v1165_v29, %v420_v12 }
  0x51   :  { %v396_v19 = vadd.f32 %v395_v60, %v393_v10  ;;  %v404_v21 = vmul.f32 %v1205_v58, %v403_v2  ;;  %v426_v22 = vstv %s1275_s17  ;;  %v429_v23 = vstv %s1277_s2  ;;  %s1403_s17 = sld [smem:[#allocation2 + $0x59]]  ;;  %s1405_s2 = sld [smem:[#allocation2 + $0x5a]] }
  0x52   :  { %v1333_v25 = vadd.f32 %v375_v55, %v373_v7  ;;  %v407_v26 = vmul.f32 %v1220_v5, %v406_v4  ;;  %v419_v27 = vadd.f32 %v418_v11, %v416_v17  ;;  %v424_v28 = vmul.f32 %v1173_v34, %v423_v13 }
  0x53   :  { %v399_v30 = vadd.f32 %v398_v62, %v396_v19  ;;  %v427_v31 = vmul.f32 %v1181_v39, %v426_v22  ;;  %v432_v32 = vstv %s1286_s18  ;;  %v444_v33 = vstv %s1288_s19  ;;  %s1410_s18 = sld [smem:[#allocation2 + $0x5b]]  ;;  %s1416_s19 = sld [smem:[#allocation2 + $0x5c]] }
  0x54   :  { %v422_v35 = vadd.f32 %v421_v18, %v419_v27  ;;  %v430_v36 = vmul.f32 %v1187_v44, %v429_v23  ;;  %v435_v37 = vstv %s1294_s20  ;;  %v445_v38 = vmul.f32 %v1144_v15, %v444_v33  ;;  %s1418_s20 = sld [smem:[#allocation2 + $0x5d]] }
  0x55   :  { %v402_v40 = vadd.f32 %v401_v16, %v399_v30  ;;  %v446_v41 = vstv %s1296_s21  ;;  %v449_v42 = vstv %s1301_s22  ;;  %v452_v43 = vstv %s1303_s23  ;;  %s1423_s21 = sld [smem:[#allocation2 + $0x5e]]  ;;  %s1427_s22 = sld [smem:[#allocation2 + $0x5f]] }
  0x56   :  { %v425_v45 = vadd.f32 %v424_v28, %v422_v35  ;;  %v438_v46 = vstv %s1308_s24  ;;  %v447_v47 = vmul.f32 %v1150_v20, %v446_v41  ;;  %v450_v48 = vmul.f32 %v1157_v24, %v449_v42  ;;  %s1429_s23 = sld [smem:[#allocation2 + $0x60]] }
  0x57   :  { %v405_v49 = vadd.f32 %v404_v21, %v402_v40  ;;  %v433_v51 = vmul.f32 %v1199_v53, %v432_v32  ;;  %v455_v52 = vstv %s1313_s1  ;;  %v458_v54 = vstv %s1315_s25  ;;  %s1434_s24 = sld [smem:[#allocation6 + $0x10]]  ;;  %s1438_s1 = sld [smem:[#allocation2 + $0x61]] }
  0x58   :  { %v428_v55 = vadd.f32 %v427_v31, %v425_v45  ;;  %v448_v56 = vadd.f32 %v447_v47, %v445_v38  ;;  %v453_v57 = vmul.f32 %v1165_v29, %v452_v43  ;;  %v461_v59 = vstv %s1320_s26  ;;  %s1440_s25 = sld [smem:[#allocation2 + $0x62]]  ;;  %s1444_s26 = sld [smem:[#allocation2 + $0x63]] }
  0x59   :  { %v436_v60 = vmul.f32 %v1205_v58, %v435_v37  ;;  %v439_v61 = vmul.f32 %v1220_v5, %v438_v46  ;;  %v456_v62 = vmul.f32 %v1173_v34, %v455_v52  ;;  %v459_v63 = vmul.f32 %v1181_v39, %v458_v54 }
  0x5a   :  { %v408_v2 = vadd.f32 %v407_v26, %v405_v49  ;;  %v431_v3 = vadd.f32 %v430_v36, %v428_v55  ;;  %v451_v4 = vadd.f32 %v450_v48, %v448_v56  ;;  %v464_v6 = vstv %s1329_s27  ;;  %s1446_s27 = sld [smem:[#allocation2 + $0x64]] }
  0x5b   :  { %v462_v0 = vmul.f32 %v1187_v44, %v461_v59  ;;  %v476_v7 = vstv %s1331_s28  ;;  %v478_v8 = vstv %s1337_s29  ;;  %v481_v1 = vstv %s1339_s0  ;;  %s1451_s28 = sld [smem:[#allocation2 + $0x65]]  ;;  %s1453_s29 = sld [smem:[#allocation2 + $0x66]] }
  0x5c   :  { %v434_v9 = vadd.f32 %v433_v51, %v431_v3  ;;  %v454_v10 = vadd.f32 %v453_v57, %v451_v4  ;;  %v467_v11 = vstv %s1344_s30  ;;  %v477_v12 = vmul.f32 %v1144_v15, %v476_v7  ;;  %s1457_s0 = sld [smem:[#allocation2 + $0x67]]  ;;  %s1463_s30 = sld [smem:[#allocation2 + $0x68]] }
  0x5d   :  { %v465_v13 = vmul.f32 %v1199_v53, %v464_v6  ;;  %v470_v16 = vstv %s1349_s4  ;;  %v479_v17 = vmul.f32 %v1150_v20, %v478_v8  ;;  %v484_v18 = vstv %s1351_s5  ;;  %s1465_s4 = sld [smem:[#allocation2 + $0x69]]  ;;  %s1472_s5 = sld [smem:[#allocation2 + $0x6a]] }
  0x5e   :  { %v437_v19 = vadd.f32 %v436_v60, %v434_v9  ;;  %v457_v21 = vadd.f32 %v456_v62, %v454_v10  ;;  %v482_v22 = vmul.f32 %v1157_v24, %v481_v1  ;;  %v487_v23 = vstv %s1356_s6  ;;  %s1477_s6 = sld [smem:[#allocation2 + $0x6b]] }
  0x5f   :  { %v313_v26 = vstv %s1368_s8  ;;  %v345_v27 = vstv %s1370_s9  ;;  %v480_v28 = vadd.f32 %v479_v17, %v477_v12  ;;  %v485_v30 = vmul.f32 %v1165_v29, %v484_v18  ;;  %s1485_s8 = sld [smem:[#allocation2 + $0x6d]]  ;;  %s1487_s9 = sld [smem:[#allocation2 + $0x6e]] }
  0x60   :  { %v314_v31 = vadd.f32 %v313_v26, %v1290_v50  ;;  %v346_v32 = vadd.f32 %v345_v27, %v1322_v14  ;;  %v377_v33 = vstv %s1376_s10  ;;  %v409_v35 = vstv %s1378_s11  ;;  %s1494_s10 = sld [smem:[#allocation2 + $0x6f]]  ;;  %s1496_s11 = sld [smem:[#allocation2 + $0x70]] }
  0x61   :  { %v378_v36 = vadd.f32 %v377_v33, %v1333_v25  ;;  %v440_v37 = vadd.f32 %v439_v61, %v437_v19  ;;  %v468_v38 = vmul.f32 %v1205_v58, %v467_v11  ;;  %v490_v40 = vstv %s1364_s7  ;;  %s1479_s7 = sld [smem:[#allocation2 + $0x6c]] }
  0x62   :  { %v441_v41 = vstv %s1383_s13  ;;  %v460_v42 = vadd.f32 %v459_v63, %v457_v21  ;;  %v483_v50 = vadd.f32 %v482_v22, %v480_v28  ;;  %v488_v14 = vmul.f32 %v1173_v34, %v487_v23  ;;  %s1503_s13 = sld [smem:[#allocation2 + $0x72]] }
  0x63   :  { %877 = vtanh.f32 %v314_v31  ;;  %v410_v43 = vadd.f32 %v409_v35, %v408_v2  ;;  %v471_v25 = vmul.f32 %v1220_v5, %v470_v16  ;;  %v493_v45 = vstv %s1381_s12  ;;  %s1501_s12 = sld [smem:[#allocation2 + $0x71]] }
  0x64   :  { %879 = vtanh.f32 %v346_v32  ;;  %v463_v46 = vadd.f32 %v462_v0, %v460_v42  ;;  %v486_v47 = vadd.f32 %v485_v30, %v483_v50  ;;  %v491_v48 = vmul.f32 %v1181_v39, %v490_v40 }
  0x65   :  { %881 = vtanh.f32 %v378_v36  ;;  %v442_v49 = vadd.f32 %v441_v41, %v440_v37  ;;  %v473_v51 = vstv %s1393_s15  ;;  %v496_v52 = vstv %s1391_s14  ;;  %s1510_s14 = sld [smem:[#allocation2 + $0x73]]  ;;  %s1515_s15 = sld [smem:[#allocation2 + $0x74]] }
  0x66   :  { %v466_v54 = vadd.f32 %v465_v13, %v463_v46  ;;  %v489_v55 = vadd.f32 %v488_v14, %v486_v47  ;;  %v494_v56 = vmul.f32 %v1187_v44, %v493_v45  ;;  %v499_v57 = vstv %s1399_s16  ;;  %s1517_s16 = sld [smem:[#allocation6 + $0x11]] }
  0x67   :  { %883 = vtanh.f32 %v410_v43  ;;  %v497_v59 = vmul.f32 %v1199_v53, %v496_v52  ;;  %v502_v60 = vstv %s1403_s17  ;;  %v508_v61 = vstv %s1405_s2  ;;  %s1526_s17 = sld [smem:[#allocation2 + $0x75]]  ;;  %s1528_s2 = sld [smem:[#allocation2 + $0x76]] }
  0x68   :  { %v469_v62 = vadd.f32 %v468_v38, %v466_v54  ;;  %v492_v63 = vadd.f32 %v491_v48, %v489_v55  ;;  %v509_v2 = vmul.f32 %v1144_v15, %v508_v61  ;;  %v510_v3 = vstv %s1410_s18  ;;  %s1534_s18 = sld [smem:[#allocation2 + $0x77]] }
  0x69   :  { %v500_v4 = vmul.f32 %v1205_v58, %v499_v57  ;;  %v511_v6 = vmul.f32 %v1150_v20, %v510_v3  ;;  %v513_v0 = vstv %s1416_s19  ;;  %v516_v7 = vstv %s1418_s20  ;;  %s1536_s19 = sld [smem:[#allocation2 + $0x78]]  ;;  %s1542_s20 = sld [smem:[#allocation2 + $0x79]] }
  0x6a   :  { %v472_v8 = vadd.f32 %v471_v25, %v469_v62  ;;  %v495_v1 = vadd.f32 %v494_v56, %v492_v63  ;;  %v514_v9 = vmul.f32 %v1157_v24, %v513_v0  ;;  %v519_v10 = vstv %s1423_s21  ;;  %s1544_s21 = sld [smem:[#allocation2 + $0x7a]] }
  0x6b   :  { %v512_v11 = vadd.f32 %v511_v6, %v509_v2  ;;  %v517_v12 = vmul.f32 %v1165_v29, %v516_v7  ;;  %v522_v13 = vstv %s1427_s22  ;;  %v525_v16 = vstv %s1429_s23  ;;  %s1548_s22 = sld [smem:[#allocation2 + $0x7b]]  ;;  %s1550_s23 = sld [smem:[#allocation2 + $0x7c]] }
  0x6c   :  { %885 = vtanh.f32 %v442_v49  ;;  %v498_v17 = vadd.f32 %v497_v59, %v495_v1  ;;  %v503_v18 = vmul.f32 %v1220_v5, %v502_v60  ;;  %v474_v21 = vadd.f32 %v473_v51, %v472_v8 }
  0x6d   :  { %v1475_v19 = vpop.eup %877  ;;  %v505_v22 = vstv %s1434_s24  ;;  %v515_v23 = vadd.f32 %v514_v9, %v512_v11  ;;  %v520_v26 = vmul.f32 %v1173_v34, %v519_v10  ;;  %v523_v30 = vmul.f32 %v1181_v39, %v522_v13  ;;  %s1558_s24 = sld [smem:[#allocation6 + $0x12]] }
  0x6e   :  { %v1483_v27 = vpop.eup %879  ;;  %v501_v28 = vadd.f32 %v500_v4, %v498_v17  ;;  %v526_v31 = vmul.f32 %v1187_v44, %v525_v16  ;;  %v528_v32 = vstv %s1438_s1  ;;  %v531_v36 = vstv %s1440_s25  ;;  %s1567_s1 = sld [smem:[#allocation2 + $0x7d]]  ;;  %s1572_s25 = sld [smem:[#allocation2 + $0x82]] }
  0x6f   :  { %v1492_v33 = vpop.eup %881  ;;  %v518_v35 = vadd.f32 %v517_v12, %v515_v23  ;;  %v534_v37 = vstv %s1444_s26  ;;  %v540_v38 = vstv %s1446_s27  ;;  %v542_v42 = vstv %s1451_s28  ;;  %s1574_s26 = sld [smem:[#allocation2 + $0x83]]  ;;  %s1578_s27 = sld [smem:[#allocation2 + $0x84]] }
  0x70   :  { %v504_v40 = vadd.f32 %v503_v18, %v501_v28  ;;  %v541_v41 = vmul.f32 %v1144_v15, %v540_v38  ;;  %v545_v50 = vstv %s1453_s29  ;;  %v543_v25 = vmul.f32 %v1150_v20, %v542_v42  ;;  %s1580_s28 = sld [smem:[#allocation2 + $0x85]]  ;;  %s1591_s29 = sld [smem:[#allocation2 + $0x7e]] }
  0x71   :  { %v1508_v14 = vpop.eup %883  ;;  %v521_v43 = vadd.f32 %v520_v26, %v518_v35  ;;  %v546_v45 = vmul.f32 %v1157_v24, %v545_v50  ;;  %v548_v46 = vstv %s1457_s0  ;;  %887 = vtanh.f32 %v474_v21  ;;  %s1593_s0 = sld [smem:[#allocation2 + $0x86]] }
  0x72   :  { %v551_v47 = vstv %s1463_s30  ;;  %v554_v48 = vstv %s1465_s4  ;;  %v529_v51 = vmul.f32 %v1199_v53, %v528_v32  ;;  %v544_v52 = vadd.f32 %v543_v25, %v541_v41  ;;  %s1597_s30 = sld [smem:[#allocation6 + $0x13]]  ;;  %s1601_s4 = sld [smem:[#allocation2 + $0x87]] }
  0x73   :  { %v524_v49 = vadd.f32 %v523_v30, %v521_v43  ;;  %v549_v54 = vmul.f32 %v1165_v29, %v548_v46  ;;  %v506_v55 = vadd.f32 %v505_v22, %v504_v40  ;;  %v532_v56 = vmul.f32 %v1205_v58, %v531_v36 }
  0x74   :  { %v535_v57 = vmul.f32 %v1220_v5, %v534_v37  ;;  %v557_v59 = vstv %s1472_s5  ;;  %v547_v61 = vadd.f32 %v546_v45, %v544_v52  ;;  %v552_v62 = vmul.f32 %v1173_v34, %v551_v47  ;;  %s1607_s5 = sld [smem:[#allocation2 + $0x7f]] }
  0x75   :  { %v527_v60 = vadd.f32 %v526_v31, %v524_v49  ;;  %v555_v63 = vmul.f32 %v1181_v39, %v554_v48  ;;  %v558_v3 = vmul.f32 %v1187_v44, %v557_v59  ;;  %v560_v4 = vstv %s1477_s6  ;;  %s1609_s6 = sld [smem:[#allocation2 + $0x88]] }
  0x76   :  { %v1532_v2 = vpop.eup %885  ;;  %v563_v6 = vstv %s1479_s7  ;;  %v572_v0 = vstv %s1487_s9  ;;  %v550_v8 = vadd.f32 %v549_v54, %v547_v61  ;;  %v566_v1 = vstv %s1485_s8  ;;  %s1616_s7 = sld [smem:[#allocation2 + $0x89]]  ;;  %s1622_s8 = sld [smem:[#allocation2 + $0x80]] }
  0x77   :  { %v530_v7 = vadd.f32 %v529_v51, %v527_v60  ;;  %v573_v9 = vmul.f32 %v1144_v15, %v572_v0  ;;  %v574_v10 = vstv %s1494_s10  ;;  %v577_v11 = vstv %s1496_s11  ;;  %s1624_s9 = sld [smem:[#allocation2 + $0x8a]]  ;;  %s838_s10 = sld [smem:[#allocation2 + $0x81]] }
  0x78   :  { %v580_v12 = vstv %s1501_s12  ;;  %v583_v13 = vstv %s1503_s13  ;;  %v553_v17 = vadd.f32 %v552_v62, %v550_v8  ;;  %v575_v18 = vmul.f32 %v1150_v20, %v574_v10  ;;  %s848_s11 = sld [smem:[#allocation2 + $0x8b]]  ;;  %s849_s12 = sld [smem:[#allocation6 + $0x14]] }
  0x79   :  { %v533_v16 = vadd.f32 %v532_v56, %v530_v7  ;;  %v578_v21 = vmul.f32 %v1157_v24, %v577_v11  ;;  %v537_v22 = vstv %s1517_s16  ;;  %v561_v23 = vmul.f32 %v1199_v53, %v560_v4  ;;  %s850_s13 = sld [smem:[#allocation6 + $0x15]] }
  0x7a   :  { %v586_v15 = vstv %s1510_s14  ;;  %v589_v26 = vstv %s1515_s15  ;;  %v556_v30 = vadd.f32 %v555_v63, %v553_v17  ;;  %v576_v31 = vadd.f32 %v575_v18, %v573_v9  ;;  %s953_s14 = smov [#allocation7]  }
  0x7b   :  { %v536_v28 = vadd.f32 %v535_v57, %v533_v16  ;;  %v581_v32 = vmul.f32 %v1165_v29, %v580_v12  ;;  %v1565_v35 = vpop.eup %887  ;;  %889 = vtanh.f32 %v506_v55  ;;  %v564_v20 = vmul.f32 %v1205_v58, %v563_v6  ;;  %s676_s15 = sshll.u32 %s953_s14, 4  ;;  %s677_s15 = int_to_ptr.vmem [resolvable:$true] %s676_s15 }
  0x7c   :  { %v567_v24 = vmul.f32 %v1220_v5, %v566_v1  ;;  %v584_v36 = vmul.f32 %v1173_v34, %v583_v13  ;;  %v559_v29 = vadd.f32 %v558_v3, %v556_v30  ;;  %v579_v37 = vadd.f32 %v578_v21, %v576_v31  ;;  %s923_s16 = scalar_lea.vmem %s677_s15, 32  ;;  %p928_p9 = scmp.lt.s32.totalorder %s677_s15, %s677_s15 }
  0x7d   :  { %v587_v38 = vmul.f32 %v1181_v39, %v586_v15  ;;  %v590_v40 = vmul.f32 %v1187_v44, %v589_v26  ;;  %v538_v41 = vadd.f32 %v537_v22, %v536_v28  ;;  %v592_v34 = vstv %s1526_s17  ;;  %p924_p8 = scmp.ne.s32.totalorder %s677_s15, %s923_s16  ;;  %p929_p10 = scmp.lt.s32.totalorder %s923_s16, %s923_s16 }
  0x7e   :  { %v595_v42 = vstv %s1528_s2  ;;  %v604_v50 = vstv %s1536_s19  ;;  %v562_v43 = vadd.f32 %v561_v23, %v559_v29  ;;  %v582_v25 = vadd.f32 %v581_v32, %v579_v37 }
  0x7f   :  { %v598_v45 = vstv %s1534_s18  ;;  %v605_v46 = vmul.f32 %v1475_v19, %v604_v50  ;;  %v606_v47 = vstv %s1542_s20  ;;  %v609_v48 = vstv %s1544_s21  ;;  %p930_p11 = por %p929_p10, %p928_p9 }
  0x80   :  { %v612_v49 = vstv %s1548_s22  ;;  %v615_v39 = vstv %s1550_s23  ;;  %v565_v44 = vadd.f32 %v564_v20, %v562_v43  ;;  %v585_v51 = vadd.f32 %v584_v36, %v582_v25 }
  0x81   :  { %v607_v52 = vmul.f32 %v1483_v27, %v606_v47  ;;  %v610_v54 = vmul.f32 %v1492_v33, %v609_v48  ;;  %891 = vtanh.f32 %v538_v41  ;;  %v569_v55 = vstv %s1558_s24  ;;  %p931_p12 = pnand %p930_p11, %p924_p8 }
  0x82   :  { %v593_v56 = vmul.f32 %v1199_v53, %v592_v34  ;;  %v568_v57 = vadd.f32 %v567_v24, %v565_v44  ;;  %v588_v59 = vadd.f32 %v587_v38, %v585_v51  ;;  %v613_v61 = vmul.f32 %v1508_v14, %v612_v49 }
  0x83   :  { %v608_v60 = vadd.f32 %v607_v52, %v605_v46  ;;  %v596_v62 = vmul.f32 %v1205_v58, %v595_v42  ;;  %v599_v63 = vmul.f32 %v1220_v5, %v598_v45  ;;  %v616_v3 = vmul.f32 %v1532_v2, %v615_v39 }
  0x84   :  { %v570_v53 = vadd.f32 %v569_v55, %v568_v57  ;;  %v591_v4 = vadd.f32 %v590_v40, %v588_v59  ;;  %v618_v0 = vstv %s1567_s1  ;;  %v636_v8 = vstv %s1572_s25 }
  0x85   :  { %v611_v6 = vadd.f32 %v610_v54, %v608_v60  ;;  %v890_v7 = vpop.eup %889  ;;  %v638_v1 = vstv %s1574_s26  ;;  %v641_v9 = vstv %s1578_s27  ;;  %v644_v58 = vstv %s1580_s28 }
  0x86   :  { %893 = vtanh.f32 %v570_v53  ;;  %v594_v5 = vadd.f32 %v593_v56, %v591_v4  ;;  %v637_v11 = vmul.f32 %v1475_v19, %v636_v8  ;;  %v619_v12 = vmul.f32 %v1565_v35, %v618_v0 }
  0x87   :  { %v614_v10 = vadd.f32 %v613_v61, %v611_v6  ;;  %v639_v13 = vmul.f32 %v1483_v27, %v638_v1  ;;  %v642_v16 = vmul.f32 %v1492_v33, %v641_v9  ;;  %v621_v21 = vstv %s1591_s29 }
  0x88   :  { %v597_v17 = vadd.f32 %v596_v62, %v594_v5  ;;  %v647_v22 = vstv %s1593_s0  ;;  %v601_v23 = vstv %s1597_s30  ;;  %v645_v19 = vmul.f32 %v1508_v14, %v644_v58 }
  0x89   :  { %v617_v18 = vadd.f32 %v616_v3, %v614_v10  ;;  %v640_v15 = vadd.f32 %v639_v13, %v637_v11  ;;  %v650_v28 = vstv %s1601_s4  ;;  %v622_v33 = vmul.f32 %v890_v7, %v621_v21 }
  0x8a   :  { %v600_v26 = vadd.f32 %v599_v63, %v597_v17  ;;  %v648_v32 = vmul.f32 %v1532_v2, %v647_v22  ;;  %v624_v24 = vstv %s1607_s5  ;;  %v653_v36 = vstv %s1609_s6 }
  0x8b   :  { %v892_v27 = vpop.eup %891  ;;  %v620_v30 = vadd.f32 %v619_v12, %v617_v18  ;;  %v643_v31 = vadd.f32 %v642_v16, %v640_v15  ;;  %v651_v37 = vmul.f32 %v1565_v35, %v650_v28  ;;  %v656_v14 = vstv %s1616_s7 }
  0x8c   :  { %v602_v20 = vadd.f32 %v601_v23, %v600_v26  ;;  %v625_v40 = vmul.f32 %v892_v27, %v624_v24  ;;  %v654_v34 = vmul.f32 %v890_v7, %v653_v36  ;;  %v627_v50 = vstv %s1622_s8 }
  0x8d   :  { %v646_v29 = vadd.f32 %v645_v19, %v643_v31  ;;  %v623_v38 = vadd.f32 %v622_v33, %v620_v30  ;;  %v659_v43 = vstv %s1624_s9  ;;  %v657_v2 = vmul.f32 %v892_v27, %v656_v14 }
  0x8e   :  { %895 = vtanh.f32 %v602_v20  ;;  %v630_v49 = vstv %s838_s10  ;;  %v662_v39 = vstv %s848_s11  ;;  %v633_v56 = vstv %s849_s12 }
  0x8f   :  { %v649_v41 = vadd.f32 %v648_v32, %v646_v29  ;;  %v626_v45 = vadd.f32 %v625_v40, %v623_v38  ;;  %v665_v57 = vstv %s850_s13 }
  0x90   :  { %v894_v42 = vpop.eup %893 }
  0x91   :  { %v652_v25 = vadd.f32 %v651_v37, %v649_v41  ;;  %v628_v46 = vmul.f32 %v894_v42, %v627_v50  ;;  %v660_v48 = vmul.f32 %v894_v42, %v659_v43 }
  0x93   :  { %v655_v47 = vadd.f32 %v654_v34, %v652_v25  ;;  %v629_v44 = vadd.f32 %v628_v46, %v626_v45 }
  0x95   :  { %v658_v35 = vadd.f32 %v657_v2, %v655_v47 }
  0x97   :  { %v661_v51 = vadd.f32 %v660_v48, %v658_v35 }
  0x98   :  { %v896_v52 = vpop.eup %895 }
  0x99   :  { %v631_v54 = vmul.f32 %v896_v52, %v630_v49  ;;  %v663_v55 = vmul.f32 %v896_v52, %v662_v39 }
  0x9b   :  { %v632_v59 = vadd.f32 %v631_v54, %v629_v44  ;;  %v664_v60 = vadd.f32 %v663_v55, %v661_v51 }
  0x9d   :  { %v634_v61 = vadd.f32 %v633_v56, %v632_v59  ;;  %v666_v62 = vadd.f32 %v665_v57, %v664_v60 }
  0x9f   :  { %897 = vtanh.f32 %v634_v61 }
  0xa0   :  { %899 = vtanh.f32 %v666_v62 }
  0xa9   :  { %v898_v63 = vpop.eup %897 }
  0xaa   :  { %v900_v3 = vpop.eup %899  ;;  %668 = vst [vmem:[#allocation7] sm:$0x1] %v898_v63 }
  0xab   :  { %670 = vst [vmem:[#allocation7 + $0x1] sm:$0x1] %v900_v3 }
  0xac   :  { %934 = shalt.err (!%p931_p12)
}
  0xad   :  { %s935_s18 = scalar_lea.hbm %s1653_s3, 32 }
  0xae   :  { %p936_p13 = scmp.ne.s32.totalorder %s1653_s3, %s935_s18  ;;  %p939_p0 = scmp.lt.u32.totalorder %s935_s18, %s1653_s3 }
  0xb0   :  { %p941_p1 = pnand %p939_p0, %p936_p13 }
  0xb2   :  { %944 = shalt.err (!%p941_p1)
}
  0xb3   :  { %s954_s23 = smov 16   ;;  %s955_s24 = smov 1  }
  0xb4   :  { %682 = dma.vmem_to_hbm [thread:$0]  %s677_s15, 32, %s1653_s3, [#allocation3], %s954_s23, %s954_s23, %s955_s24  }
  0xb5   :  { %949 = dma.done.wait [#allocation3], 32  }
  0xb6   :  { %950 = vsyncadd [#allocation3], 4294967264 }
  0xb7   :  { %686 = vsyncpa [#allocation3], 1 }
  0xb8   :  { %687 = vsyncpa [#allocation4], 1 }
  0xb9   :  { %688 = vsyncpa [#allocation5], 1 }

</bundles_post_ra>
